<compile_context>
chip_gen: v5e
topology: v5e:2x2
jax: 0.10.0
libtpu: 0.0.40
codegen_flags: <defaults>
</compile_context>

<pallas_src>
import numpy as np
import jax
import jax.numpy as jnp
from jax.experimental import pallas as pl
from jax.experimental.pallas import tpu as pltpu


def _round_up(v, m):
    return ((v + m - 1) // m) * m


def film_siren_kernel(x_ref, w_ref, c_ref, o_ref):
    # x_ref : (Cin, TN)    channels-first point tile (lane-dense DMA)
    # w_ref : (Cout, Cin)  per-batch FiLM-folded weight  gamma[b] * W
    # c_ref : (Cout, 1)    per-batch FiLM-folded bias    gamma[b] * bias + beta[b]  (f32)
    # o_ref : (TN, Cout)   points-major output block (stored directly, no outer transpose)
    z = jnp.dot(w_ref[...], x_ref[...], preferred_element_type=jnp.float32) + c_ref[...]
    # sin + transpose in f32 (XLU rides an otherwise idle slot), cast only at the store.
    o_ref[...] = jnp.sin(z).T.astype(o_ref.dtype)


def film_siren(x, style, params, *, tn_max=16384,
               in_dtype=jnp.bfloat16, out_dtype=jnp.bfloat16):
    """x: (B, N, Cin), style: (B, S) -> (B, N, Cout). Matches FiLMSiren.forward.

    in_dtype / out_dtype = bf16 is the perf path (halves input DMA and output
    writeback); pass float32 for bit-accurate-ish results vs an f32 reference.
    """
    B, N, Cin = x.shape
    Cout = params["weight"].shape[0]

    # FiLM linears hoisted out of the hot path (one tiny (B,S)@(S,Cout) matmul each),
    # then folded into per-batch weight/bias columns (all in f32).
    gamma = 15.0 * (style @ params["gamma_weight"].T + params["gamma_bias"]) + 30.0  # (B, Cout)
    beta = 0.25 * (style @ params["beta_weight"].T + params["beta_bias"])            # (B, Cout)
    w = params["weight"].astype(jnp.float32)                                         # (Cout, Cin)
    b = params["bias"].astype(jnp.float32)                                           # (Cout,)
    w_b = (gamma[:, :, None] * w[None, :, :]).astype(in_dtype)                       # (B, Cout, Cin)
    c_b = (gamma * b[None, :] + beta).astype(jnp.float32)[..., None]                 # (B, Cout, 1)

    # Channels-first input view; the dtype cast fuses into this (cheap: 12 B/point).
    x_cf = jnp.transpose(x, (0, 2, 1)).astype(in_dtype)                              # (B, Cin, N)

    # Point tile: multiple of 128 lanes; no padding of N — Pallas masks the ragged
    # last block (OOB output columns are dropped, OOB input columns only feed them).
    tn = max(128, 128 * (min(tn_max, _round_up(N, 128)) // 128))
    nt = pl.cdiv(N, tn)

    out = pl.pallas_call(
        film_siren_kernel,
        out_shape=jax.ShapeDtypeStruct((B, N, Cout), out_dtype),
        grid=(B, nt),
        in_specs=[
            pl.BlockSpec((None, Cin, tn), lambda b_, n_: (b_, 0, n_)),    # x tile
            pl.BlockSpec((None, Cout, Cin), lambda b_, n_: (b_, 0, 0)),   # gamma[b]*W
            pl.BlockSpec((None, Cout, 1), lambda b_, n_: (b_, 0, 0)),     # gamma[b]*bias+beta[b]
        ],
        out_specs=pl.BlockSpec((None, tn, Cout), lambda b_, n_: (b_, n_, 0)),
        compiler_params=pltpu.CompilerParams(
            dimension_semantics=("parallel", "parallel"),
            # Worst case at tn=16384 (f32 out): ~2x8 MiB out blocks + ~1 MiB input
            # + ~10 MiB intermediates ≈ 30 MiB.  64 MiB limit clears v5e's 16 MiB
            # scoped default and stays within every generation's physical VMEM.
            vmem_limit_bytes=64 * 1024 * 1024,
        ),
    )(x_cf, w_b, c_b)
    return out


def init_params(key, in_channel, out_channel, style_dim, is_first=False):
    """Deterministic synthetic init matching the shapes/scales of FiLMSiren.__init__."""
    ks = jax.random.split(key, 6)
    if is_first:
        w_bound = 1.0 / 3.0
    else:
        w_bound = np.sqrt(6.0 / in_channel) / 25.0
    weight = jax.random.uniform(ks[0], (out_channel, in_channel),
                                minval=-w_bound, maxval=w_bound, dtype=jnp.float32)
    b_bound = np.sqrt(1.0 / in_channel)
    bias = jax.random.uniform(ks[1], (out_channel,),
                              minval=-b_bound, maxval=b_bound, dtype=jnp.float32)

    # LinearLayer (gamma / beta): 0.25 * kaiming_normal(fan_in, leaky_relu a=0.2)
    gain = np.sqrt(2.0 / (1.0 + 0.2 ** 2))
    std = 0.25 * gain / np.sqrt(style_dim)
    gamma_weight = std * jax.random.normal(ks[2], (out_channel, style_dim), dtype=jnp.float32)
    beta_weight = std * jax.random.normal(ks[3], (out_channel, style_dim), dtype=jnp.float32)
    lb_bound = np.sqrt(1.0 / style_dim)
    gamma_bias = jax.random.uniform(ks[4], (out_channel,),
                                    minval=-lb_bound, maxval=lb_bound, dtype=jnp.float32)
    beta_bias = jax.random.uniform(ks[5], (out_channel,),
                                   minval=-lb_bound, maxval=lb_bound, dtype=jnp.float32)
    return dict(weight=weight, bias=bias,
                gamma_weight=gamma_weight, gamma_bias=gamma_bias,
                beta_weight=beta_weight, beta_bias=beta_bias)


def film_siren_reference(x, style, p):
    out = jnp.einsum("bnc,oc->bno", x, p["weight"]) + p["bias"]
    gamma = 15.0 * (style @ p["gamma_weight"].T + p["gamma_bias"]) + 30.0
    beta = 0.25 * (style @ p["beta_weight"].T + p["beta_bias"])
    gamma = gamma[:, None, :]   # (B, 1, Cout) -- matches .view(batch, -1, out.shape[-1])
    beta = beta[:, None, :]
    return jnp.sin(gamma * out + beta)


if __name__ == "__main__":
    B, N = 2, 1000                      # N not a multiple of the tile -> exercises the masked ragged block
    in_channel, out_channel, style_dim = 3, 32, 16

    key = jax.random.PRNGKey(0)
    kx, ks, kp = jax.random.split(key, 3)
    x = jax.random.normal(kx, (B, N, in_channel), dtype=jnp.float32)
    style = jax.random.normal(ks, (B, style_dim), dtype=jnp.float32)
    params = init_params(kp, in_channel, out_channel, style_dim, is_first=True)

    ref = film_siren_reference(x, style, params)

    # f32 path: tight check.  Small tn_max -> grid (2, 4) with a ragged last tile.
    out_f32 = film_siren(x, style, params, tn_max=256,
                         in_dtype=jnp.float32, out_dtype=jnp.float32)
    out_f32 = jax.block_until_ready(out_f32)
    np.testing.assert_allclose(np.asarray(out_f32), np.asarray(ref),
                               rtol=1e-4, atol=2e-4)

    # Default bf16 perf path: loose smoke test (|gamma| ~ 30-50 amplifies bf16
    # input rounding into up to ~0.1 absolute error in sin; a layout bug would
    # instead produce O(1) mismatches).
    out_bf16 = film_siren(x, style, params, tn_max=256)
    out_bf16 = jax.block_until_ready(out_bf16)
    np.testing.assert_allclose(np.asarray(out_bf16.astype(jnp.float32)),
                               np.asarray(ref), atol=0.5)

    print("KERNEL_OK")
</pallas_src>

<mosaic_0001>
module attributes {stable_mosaic.version = 11 : i64} {
  func.func @film_siren_kernel(%arg0: i32, %arg1: i32, %arg2: memref<1x3x256xf32, #tpu.memory_space<vmem>>, %arg3: memref<1x32x3xf32, #tpu.memory_space<vmem>>, %arg4: memref<1x32x1xf32, #tpu.memory_space<vmem>>, %arg5: memref<1x256x32xf32, #tpu.memory_space<vmem>>) attributes {dimension_semantics = [#tpu.dimension_semantics<parallel>, #tpu.dimension_semantics<parallel>], iteration_bounds = array<i64: 2, 4>, scalar_prefetch = 0 : i64, scratch_operands = 0 : i64, tpu.core_type = #tpu.core_type<tc>, window_params = [{transform_indices = @transform_0, window_bounds = array<i64: 1, 3, 256>}, {transform_indices = @transform_1, window_bounds = array<i64: 1, 32, 3>}, {transform_indices = @transform_2, window_bounds = array<i64: 1, 32, 1>}, {transform_indices = @transform_3, window_bounds = array<i64: 1, 256, 32>}]} {
    %c0 = arith.constant 0 : index
    %c0_0 = arith.constant 0 : index
    %c0_1 = arith.constant 0 : index
    %0 = vector.load %arg3[%c0, %c0_0, %c0_1] : memref<1x32x3xf32, #tpu.memory_space<vmem>>, vector<1x32x3xf32>
    %1 = vector.shape_cast %0 : vector<1x32x3xf32> to vector<32x3xf32>
    %c0_2 = arith.constant 0 : index
    %c0_3 = arith.constant 0 : index
    %c0_4 = arith.constant 0 : index
    %2 = vector.load %arg2[%c0_2, %c0_3, %c0_4] : memref<1x3x256xf32, #tpu.memory_space<vmem>>, vector<1x3x256xf32>
    %3 = vector.shape_cast %2 : vector<1x3x256xf32> to vector<3x256xf32>
    %cst = arith.constant dense<0.000000e+00> : vector<32x256xf32>
    %4 = tpu.matmul %1, %3, %cst {dimension_numbers = #tpu.dot_dimension_numbers<[1], [0], [0], [1], [0, 0, 1, 1], [], []>} : vector<32x3xf32>, vector<3x256xf32>, vector<32x256xf32> -> vector<32x256xf32>
    %c0_5 = arith.constant 0 : index
    %c0_6 = arith.constant 0 : index
    %c0_7 = arith.constant 0 : index
    %5 = vector.load %arg4[%c0_5, %c0_6, %c0_7] : memref<1x32x1xf32, #tpu.memory_space<vmem>>, vector<1x32x1xf32>
    %6 = vector.shape_cast %5 : vector<1x32x1xf32> to vector<32x1xf32>
    %7 = vector.broadcast %6 : vector<32x1xf32> to vector<32x256xf32>
    %8 = arith.addf %4, %7 : vector<32x256xf32>
    %9 = math.sin %8 : vector<32x256xf32>
    %10 = tpu.transpose %9, [1, 0] : vector<32x256xf32> -> vector<256x32xf32>
    %c0_8 = arith.constant 0 : index
    %c0_9 = arith.constant 0 : index
    %c0_10 = arith.constant 0 : index
    %11 = vector.load %arg5[%c0_8, %c0_9, %c0_10] : memref<1x256x32xf32, #tpu.memory_space<vmem>>, vector<1x256x32xf32>
    %12 = vector.shape_cast %11 : vector<1x256x32xf32> to vector<256x32xf32>
    %13 = vector.shape_cast %10 : vector<256x32xf32> to vector<1x256x32xf32>
    tpu.vector_store %arg5[%c0_8, %c0_9, %c0_10], %13 {strides = array<i32>} : memref<1x256x32xf32, #tpu.memory_space<vmem>>, vector<1x256x32xf32>,
    return
  }
  func.func @transform_0(%arg0: i32, %arg1: i32) -> (i32, i32, i32) {
    %c0_i32 = arith.constant 0 : i32
    %c0_i32_0 = arith.constant 0 : i32
    return %arg0, %c0_i32, %arg1 : i32, i32, i32
  }
  func.func @transform_1(%arg0: i32, %arg1: i32) -> (i32, i32, i32) {
    %c0_i32 = arith.constant 0 : i32
    %c0_i32_0 = arith.constant 0 : i32
    %c0_i32_1 = arith.constant 0 : i32
    return %arg0, %c0_i32, %c0_i32_0 : i32, i32, i32
  }
  func.func @transform_2(%arg0: i32, %arg1: i32) -> (i32, i32, i32) {
    %c0_i32 = arith.constant 0 : i32
    %c0_i32_0 = arith.constant 0 : i32
    %c0_i32_1 = arith.constant 0 : i32
    return %arg0, %c0_i32, %c0_i32_0 : i32, i32, i32
  }
  func.func @transform_3(%arg0: i32, %arg1: i32) -> (i32, i32, i32) {
    %c0_i32 = arith.constant 0 : i32
    %c0_i32_0 = arith.constant 0 : i32
    return %arg0, %arg1, %c0_i32 : i32, i32, i32
  }
}

</mosaic_0001>

<bundles_post_ra>
// kernel: tpu_custom_call.1
= control target key start
LH: loop header
LB: loop body
LE: loop exit
PB: predicated region body
PF: predicated region fallthrough
CT: control target
= control target key end

     0   :  { %s2420_s12 = smov 0   ;;  %s2422_s13 = smov 0   ;;  %s3777_s0 = inlined_call_operand.vmem [shape: f32[2,3,1000], index: 0, kind: input, shape index: {}]   ;;  %s3778_s1 = inlined_call_operand.vmem [shape: f32[2,32,3], index: 1, kind: input, shape index: {}]   ;;  %s3779_s2 = inlined_call_operand.vmem [shape: f32[2,32,1], index: 2, kind: input, shape index: {}]   ;;  %s3780_s3 = inlined_call_operand.vmem [shape: f32[2,1000,32], index: 3, kind: output, shape index: {}]  }
   0x1   :  { %s2424_s14 = smov 0   ;;  %s2426_s15 = smov 0  }
   0x2   :  { %s2428_s16 = smov 0   ;;  %s2430_s17 = smov 0  }
   0x3   :  { %s2432_s18 = smov 0  }
   0x4 LB: > { %s22_s19 = sadd.s32 1, %s2351_s16  ;;  %s25_s20 = sadd.s32 1, %s2355_s17  ;;  %s2359_s18 = sphi %s2432_s18, %s13_s18   ;;  %s2355_s17 = sphi %s2430_s17, %s3951_s17   ;;  %s2351_s16 = sphi %s2428_s16, %s3950_s16   ;;  %s2347_s15 = sphi %s2426_s15, %s3949_s15   ;;  %s2343_s14 = sphi %s2424_s14, %s3948_s14   ;;  %s2339_s13 = sphi %s2422_s13, %s3947_s13   ;;  %s2335_s12 = sphi %s2420_s12, %s3946_s12  }
   0x5   : > { %p23_p0 = scmp.ge.s32.totalorder %s22_s19, 4  ;;  %s2072_s21 = sadd.s32 4294967295, %s2359_s18  }
   0x6   : > { %p124_p1 = scmp.ne.s32.totalorder %s2339_s13, %s2335_s12  ;;  %p125_p2 = scmp.eq.s32.totalorder %s2072_s21, 7 }
   0x7   : > { %s3953_s19 = smov (%p23_p0, %s22_s19), 0  ;;  %s3955_s20 = smov (!%p23_p0, %s25_s20), %s2355_s17 }
   0x8   : > { %s110_s22 = ssub.s32 %s2351_s16, %s3953_s19  ;;  %p27_p3 = scmp.ge.s32.totalorder %s3955_s20, 2 }
   0x9   : > { %p2076_p4 = scmp.ge.s32.totalorder %s2359_s18, 1  ;;  %p2466_p5 = por %p125_p2, %p124_p1 }
   0xa   : > { %p178_p6 = scmp.lt.s32.totalorder %s2359_s18, 9  ;;  %s3957_s20 = smov (%p27_p3, %s3955_s20), 0 }
   0xb   : > { %s109_s24 = ssub.s32 %s2355_s17, %s3957_s20  ;;  %s114_s26 = sadd.s32 1, %s2339_s13 }
   0xc   : > { %p179_p7 = pnand %p2076_p4, %p178_p6  ;;  %s111_s25 = sor.u32 %s110_s22, %s109_s24 }
   0xd   : > { %p112_p8 = scmp.eq.s32.totalorder %s111_s25, 0 }
   0xe   : > { %182 = sbr.rel (%p179_p7) target bundleno = 822 (0x336), region = 32 }
   0xf   : > { %s2477_s27 = scalar_select %p112_p8, %s2339_s13, %s114_s26  }
  0x13   : > { %s2078_s28 = sshll.u32 %s2343_s14, 1  ;;  %p216_p9 = scmp.lt.s32.totalorder %s2347_s15, 1  ;;  %v3783_v0 = vmov 0   ;;  %vm286_vm0 = vcmask 1042432   ;;  %vm273_vm1 = vcmask 23552  }
  0x14   : > { %p218_p10 = scmp.lt.s32.totalorder %s2078_s28, 7  ;;  %2271 = vset.pattern.permute.xlu0 %v3783_v0  ;;  %2272 = vset.pattern.permute.xlu1 %v3783_v0  ;;  %v3803_v56 = vmov 2102212464   ;;  %v3790_v60 = vmov 920167782   ;;  %s212_s26 = sand.u32 1, %s2335_s12  }
  0x15   : > { %s217_s29 = scalar_select %p216_p9, %s2347_s15, 1 }
  0x16   : > { %s3959_s28 = smov (!%p218_p10, %s2078_s28), 7  ;;  %s2120_s12 = sshll.u32 (%p2466_p5), %s2343_s14, 5 }
  0x17   : > { %s2079_s30 = sshll.u32 %s217_s29, 3  ;;  %s2136_s5 = sshll.u32 %s217_s29, 5 }
  0x18   : > { %s221_s4 = sadd.s32 %s2079_s30, %s3959_s28  ;;  %s234_s9 = scalar_lea.vmem %s3779_s2, %s2136_s5 }
  0x19   : > { %s2080_s6 = sshll.u32 %s221_s4, 2  ;;  %v245_v1 = vld [vmem:[%s234_s9] sm:$0xff]  ;;  %v247_v3 = vld [vmem:[%s234_s9 + $0x10] sm:$0xff]  ;;  %s229_s25 = scalar_lea.vmem %s3778_s1, %s2136_s5  ;;  %v246_v4 = vld [vmem:[%s234_s9 + $0x8] sm:$0xff] }
  0x1a   : > { %s223_s21 = scalar_lea.vmem %s3777_s0, %s2080_s6  ;;  %251 = vperm.xlu0 %2271, %v245_v1   ;;  %261 = vperm.xlu1 %2272, %v247_v3   ;;  %v240_v5 = vld [vmem:[%s229_s25] sm:$0xff]  ;;  %v242_v6 = vld [vmem:[%s229_s25 + $0x10] sm:$0xff]  ;;  %v248_v9 = vld [vmem:[%s234_s9 + $0x18] sm:$0xff]  ;;  %s2077_s28 = sshll.u32 %s212_s26, 8 }
  0x1b   : > { %v244_v2 = vld [vmem:[%s223_s21] sm:$0x77]  ;;  %v241_v10 = vld [vmem:[%s229_s25 + $0x8] sm:$0xff]  ;;  %v243_v11 = vld [vmem:[%s229_s25 + $0x18] sm:$0xff]  ;;  %s3558_s29 = scalar_lea.vmem [#allocation2], %s2077_s28   ;;  %s2142_s30 = smul.u32 (%p2466_p5), 125, %s2347_s15 }
  0x1c   : > { %270 = vst [vmem:[#allocation1] ss:$2 sm:$0xff] %v244_v2  ;;  %v3788_v2 = vmov 1326507024   ;;  %s1694_s4 = ssub.s32 (%p2466_p5), 125, %s2120_s12 }
  0x1d   : > { %p1695_p11 = scmp.lt.s32.totalorder (%p2466_p5), %s1694_s4, 32  ;;  %s1700_s5 = sadd.s32 (%p2466_p5), %s2142_s30, %s2120_s12 }
  0x1e   : > { %s2123_s6 = sshll.u32 (%p2466_p5), %s1700_s5, 3 }
  0x1f   : > { %s3633_s9 = scalar_lea.vmem (%p2466_p5), %s3780_s3, %s2123_s6  }
  0x22   : > { %256 = vperm.xlu0 %2271, %v246_v4   ;;  %266 = vperm.xlu1 %2272, %v248_v9   ;;  %v3785_v4 = vmov 683565275   ;;  %v3800_v9 = vmov 2131351028  }
  0x23   : > { %v271_v7 = vld.sshfl [vmem:[#allocation1] sm:$0xff pattern:$0x75316420]  ;;  %v272_v8 = vld.sshfl [vmem:[#allocation1 + $0x8] sm:$0xff pattern:$0x75316420] }
  0x24   : > { %2085 = vmatpush.msk.msra.mxu0 %vm286_vm0, %v271_v7  ;;  %2140 = vmatpush.msk.msra.mxu2 %vm286_vm0, %v271_v7  ;;  %v3807_v7 = vmov 2475754826  }
  0x25   : > { %2090 = vmatpush.msk.msra.mxu1 %vm286_vm0, %v272_v8  ;;  %2141 = vmatpush.msk.msra.mxu3 %vm286_vm0, %v272_v8 }
  0x26   : > { %2086 = vmatmul.msk.f32.vlgmr.msra.gmra.mxu0 %vm273_vm1, %v240_v5  ;;  %2088 = vmatmul.msk.f32.vlgmr.msra.gmra.mxu2 %vm273_vm1, %v242_v6 }
  0x27   : > { %2091 = vmatmul.msk.f32.vlgmr.msra.gmra.mxu1 %vm273_vm1, %v240_v5  ;;  %2093 = vmatmul.msk.f32.vlgmr.msra.gmra.mxu3 %vm273_vm1, %v242_v6 }
  0x2e   : > { %2087 = vmatmul.msk.f32.gmra.mxu0 %vm273_vm1, %v241_v10  ;;  %2089 = vmatmul.msk.f32.gmra.mxu2 %vm273_vm1, %v243_v11 }
  0x2f   : > { %2092 = vmatmul.msk.f32.gmra.mxu1 %vm273_vm1, %v241_v10  ;;  %2094 = vmatmul.msk.f32.gmra.mxu3 %vm273_vm1, %v243_v11 }
  0x8c   : > { %v252_v12 = vpop.permute.xlu0 %251  ;;  %v262_v19 = vpop.permute.xlu1 %261 }
  0x94   : > { %v257_v36 = vpop.permute.xlu0 %256 }
  0xa3   : > { %v308_v13 = vpop.f32.mrf.mxu0 }
  0xa4   : > { %v2501_v14 = vadd.f32 %v308_v13, %v252_v12  ;;  %v337_v15 = vpop.f32.mrf.mxu1 }
  0xa5   : > { %v2503_v16 = vadd.f32 %v337_v15, %v252_v12 }
  0xa6   : > { %v352_v17 = vand.u32 2139095040, %v2501_v14 }
  0xa7   : > { %v507_v18 = vand.u32 2139095040, %v2503_v16  ;;  %v3782_v21 = vand.u32 2147483647, %v2503_v16 }
  0xa8   : > { %v353_v20 = vshrl.u32 %v352_v17, 23 }
  0xa9   : > { %v508_v22 = vshrl.u32 %v507_v18, 23  ;;  %v314_v23 = vpop.f32.mrf.mxu2  ;;  %v511_v29 = vand.u32 8388607, %v3782_v21 }
  0xaa   : > { %v2095_v24 = vadd.s32 4294967169, %v353_v20  ;;  %v2508_v25 = vadd.f32 %v314_v23, %v262_v19  ;;  %v343_v27 = vpop.f32.mrf.mxu3 }
  0xab   : > { %v2098_v26 = vadd.s32 4294967169, %v508_v22  ;;  %v2513_v32 = vadd.f32 %v343_v27, %v262_v19  ;;  %v311_v33 = vpop.f32.mrf.mxu0  ;;  %v512_v34 = vor.u32 8388608, %v511_v29 }
  0xac   : > { %3835 = vst [vmem:[#allocation3_spill] sm:$0xff] %v2508_v25  ;;  %v359_v28 = vadd.s32 1, %v2095_v24  ;;  %v972_v31 = vand.u32 2139095040, %v2508_v25  ;;  %v2516_v39 = vadd.f32 %v311_v33, %v257_v36  ;;  %v340_v18 = vpop.f32.mrf.mxu1 }
  0xad   : > { %v514_v30 = vadd.s32 1, %v2098_v26  ;;  %3836 = vst [vmem:[#allocation4_spill] sm:$0xff] %v2513_v32  ;;  %v1127_v38 = vand.u32 2139095040, %v2513_v32  ;;  %v2520_v42 = vshll.u32 %v512_v34, 8  ;;  %v3781_v44 = vand.u32 2147483647, %v2513_v32 }
  0xae   : > { %vm360_vm2 = vcmp.gt.s32.totalorder %v359_v28, 0  ;;  %v973_v35 = vshrl.u32 %v972_v31, 23  ;;  %v662_v47 = vand.u32 2139095040, %v2516_v39  ;;  %v2585_v33 = vadd.f32 %v340_v18, %v257_v36 }
  0xaf   : > { %vm515_vm3 = vcmp.gt.s32.totalorder %v514_v30, 0  ;;  %v361_v37 = vsel %vm360_vm2, %v359_v28, 0  ;;  %v1128_v45 = vshrl.u32 %v1127_v38, 23  ;;  %v2530_v50 = vand.u32 65535, %v2520_v42 }
  0xb0   : > { %v516_v40 = vsel %vm515_vm3, %v514_v30, 0  ;;  %v2518_v41 = vand.u32 31, %v361_v37  ;;  %v2107_v43 = vadd.s32 4294967169, %v973_v35  ;;  %v2524_v48 = vshrl.u32 %v361_v37, 5 }
  0xb1   : > { %v518_v46 = vand.u32 31, %v516_v40  ;;  %v2532_v52 = vshrl.u32 %v516_v40, 5  ;;  %v2535_v53 = vshrl.u32 %v2520_v42, 16  ;;  %v2110_v54 = vadd.s32 4294967169, %v1128_v45 }
  0xb2   : > { %v2527_v49 = vsub.s32 32, %v2518_v41  ;;  %v979_v51 = vadd.s32 1, %v2107_v43  ;;  %v2539_v55 = vand.u32 8388607, %v3781_v44  ;;  %v375_v57 = vshll.u32 %v3803_v56, %v2518_v41 }
  0xb3   : > { %v2543_v58 = vsub.s32 32, %v518_v46  ;;  %v663_v59 = vshrl.u32 %v662_v47, 23  ;;  %v378_v61 = vshll.u32 %v3790_v60, %v2518_v41  ;;  %vm384_vm5 = vcmp.lt.s32.totalorder %v2524_v48, 4 }
  0xb4   : > { %vm980_vm4 = vcmp.gt.s32.totalorder %v979_v51, 0  ;;  %v1134_v63 = vadd.s32 1, %v2110_v54  ;;  %v376_v1 = vshrl.u32 %v3790_v60, %v2527_v49  ;;  %v379_v3 = vshrl.u32 %v3788_v2, %v2527_v49 }
  0xb5   : > { %v2548_v62 = vsel %vm980_vm4, %v979_v51, 0  ;;  %v521_v5 = vshll.u32 %v3785_v4, %v518_v46  ;;  %v524_v8 = vshll.u32 %v3807_v7, %v518_v46  ;;  %v527_v10 = vshll.u32 %v3800_v9, %v518_v46 }
  0xb6   : > { %v2556_v6 = vand.u32 31, %v2548_v62  ;;  %vm1135_vm6 = vcmp.gt.s32.totalorder %v1134_v63, 0  ;;  %v2101_v11 = vadd.s32 4294967169, %v663_v59  ;;  %v522_v12 = vshrl.u32 %v3807_v7, %v2543_v58 }
  0xb7   : > { %v530_v13 = vshll.u32 %v3803_v56, %v518_v46  ;;  %v525_v19 = vshrl.u32 %v3800_v9, %v2543_v58  ;;  %v528_v20 = vshrl.u32 %v3803_v56, %v2543_v58  ;;  %v531_v22 = vshrl.u32 %v3790_v60, %v2543_v58 }
  0xb8   : > { %3837 = vst [vmem:[#allocation5_spill] sm:$0xff] %v2556_v6  ;;  %v2564_v15 = vsub.s32 32, %v2556_v6  ;;  %v2568_v17 = vshll.u32 %v3790_v60, %v2556_v6  ;;  %v1136_v23 = vsel %vm1135_vm6, %v1134_v63, 0  ;;  %v2576_v24 = vor.u32 %v376_v1, %v375_v57 }
  0xb9   : > { %v380_v26 = vor.u32 %v379_v3, %v378_v61  ;;  %v1138_v28 = vand.u32 31, %v1136_v23  ;;  %v533_v29 = vshll.u32 %v3790_v60, %v518_v46  ;;  %v534_v30 = vshrl.u32 %v3788_v2, %v2543_v58 }
  0xba   : > { %3838 = vst [vmem:[#allocation6_spill] sm:$0xff] %v2564_v15  ;;  %v2580_v27 = vshrl.u32 %v3788_v2, %v2564_v15  ;;  %v669_v31 = vadd.s32 1, %v2101_v11  ;;  %v2587_v34 = vor.u32 %v522_v12, %v521_v5  ;;  %vm536_vm7 = vcmp.lt.s32.totalorder %v2532_v52, 1  ;;  %v2617_v12 = vpop.permute.xlu1 %266 }
  0xbb   : > { %v1139_v37 = vsub.s32 32, %v1138_v28  ;;  %v2592_v38 = vor.u32 %v525_v19, %v524_v8  ;;  %v2594_v40 = vor.u32 %v528_v20, %v527_v10  ;;  %v1150_v43 = vshll.u32 %v3803_v56, %v1138_v28 }
  0xbc   : > { %v1000_v35 = vor.u32 %v2580_v27, %v2568_v17  ;;  %v1153_v45 = vshll.u32 %v3790_v60, %v1138_v28  ;;  %v2601_v36 = vsel %vm384_vm5, %v2576_v24, 920167782  ;;  %v2605_v46 = vsel %vm384_vm5, %v380_v26, 1326507024 }
  0xbd   : > { %v532_v47 = vor.u32 %v531_v22, %v530_v13  ;;  %v2607_v51 = vshrl.u32 %v1136_v23, 5  ;;  %v1151_v54 = vshrl.u32 %v3790_v60, %v1139_v37  ;;  %v1154_v57 = vshrl.u32 %v3788_v2, %v1139_v37  ;;  %v317_v13 = vpop.f32.mrf.mxu2 }
  0xbe   : > { %vm670_vm8 = vcmp.gt.s32.totalorder %v669_v31, 0  ;;  %v817_v59 = vand.u32 2139095040, %v2585_v33  ;;  %v535_v61 = vor.u32 %v534_v30, %v533_v29  ;;  %v1141_v63 = vshll.u32 %v3785_v4, %v1138_v28 }
  0xbf   : > { %v1147_v1 = vshll.u32 %v3800_v9, %v1138_v28  ;;  %v1148_v3 = vshrl.u32 %v3803_v56, %v1139_v37  ;;  %v1142_v5 = vshrl.u32 %v3807_v7, %v1139_v37  ;;  %v1144_v8 = vshll.u32 %v3807_v7, %v1138_v28 }
  0xc0   : > { %v1152_v10 = vor.u32 %v1151_v54, %v1150_v43  ;;  %v1155_v11 = vor.u32 %v1154_v57, %v1153_v45  ;;  %v1145_v18 = vshrl.u32 %v3800_v9, %v1139_v37  ;;  %vm1158_vm9 = vcmp.lt.s32.totalorder %v2607_v51, 3 }
  0xc1   : > { %vm1159_vm10 = vcmp.lt.s32.totalorder %v2607_v51, 4  ;;  %v671_v19 = vsel %vm670_vm8, %v669_v31, 0  ;;  %vm538_vm11 = vcmp.lt.s32.totalorder %v2532_v52, 3  ;;  %vm539_vm12 = vcmp.lt.s32.totalorder %v2532_v52, 4 }
  0xc2   : > { %v2628_v20 = vsel %vm536_vm7, %v2587_v34, %v2592_v38  ;;  %v818_v22 = vshrl.u32 %v817_v59, 23  ;;  %v1132_v23 = vor.u32 8388608, %v2539_v55  ;;  %v1149_v26 = vor.u32 %v1148_v3, %v1147_v1 }
  0xc3   : > { %v1169_v28 = vsel %vm1159_vm10, %v1155_v11, 1326507024  ;;  %v2634_v29 = vadd.f32 %v317_v13, %v2617_v12  ;;  %v995_v30 = vshll.u32 %v3803_v56, %v2556_v6  ;;  %v996_v31 = vshrl.u32 %v3790_v60, %v2564_v15 }
  0xc4   : > { %v1170_v43 = vsel %vm1158_vm9, %v1152_v10, %v1169_v28  ;;  %v2642_v45 = vand.u32 31, %v671_v19  ;;  %v545_v55 = vsel %vm539_vm12, %v532_v47, 920167782  ;;  %v1140_v54 = vshrl.u32 %v3785_v4, %v1139_v37 }
  0xc5   : > { %3839 = vst [vmem:[#allocation7_spill] sm:$0xff] %v2634_v29  ;;  %v1143_v57 = vor.u32 %v1142_v5, %v1141_v63  ;;  %v1146_v59 = vor.u32 %v1145_v18, %v1144_v8  ;;  %vm1156_vm13 = vcmp.lt.s32.totalorder %v2607_v51, 1  ;;  %v1165_v1 = vsel %vm1159_vm10, %v1152_v10, 920167782 }
  0xc6   : > { %v2651_v3 = vsub.s32 32, %v2642_v45  ;;  %v2104_v11 = vadd.s32 4294967169, %v818_v22  ;;  %v549_v13 = vsel %vm539_vm12, %v535_v61, 1326507024  ;;  %v2656_v28 = vshrl.u32 %v2548_v62, 5 }
  0xc7   : > { %v1161_v37 = vsel %vm1159_vm10, %v1149_v26, 2102212464  ;;  %v2660_v63 = vshll.u32 %v1132_v23, 8  ;;  %v2662_v5 = vor.u32 %v996_v31, %v995_v30  ;;  %vm1157_vm14 = vcmp.lt.s32.totalorder %v2607_v51, 2 }
  0xc8   : > { %3840 = vst [vmem:[#allocation8_spill] sm:$0xff] %v2656_v28  ;;  %v3787_v8 = vand.u32 2147483647, %v2585_v33  ;;  %v1282_v10 = vand.u32 2139095040, %v2634_v29  ;;  %v1164_v18 = vsel %vm1156_vm13, %v1143_v57, %v1146_v59  ;;  %v1166_v62 = vsel %vm1158_vm9, %v1149_v26, %v1165_v1 }
  0xc9   : > { %3841 = vst [vmem:[#allocation9_spill] sm:$0xff] %v2660_v63  ;;  %v2673_v61 = vshll.u32 %v3790_v60, %v2642_v45  ;;  %v2677_v22 = vshrl.u32 %v3788_v2, %v2651_v3  ;;  %v1160_v23 = vsel %vm1156_vm13, %v1140_v54, %v1143_v57  ;;  %v1162_v30 = vsel %vm1158_vm9, %v1146_v59, %v1161_v37 }
  0xca   : > { %3842 = vst [vmem:[#allocation10_spill] sm:$0xff] %v2662_v5  ;;  %v1168_v31 = vsel %vm1156_vm13, %v1146_v59, %v1149_v26  ;;  %v824_v44 = vadd.s32 1, %v2104_v11  ;;  %v2688_v1 = vsel %vm538_vm11, %v2594_v40, %v545_v55  ;;  %v2694_v21 = vsel %vm536_vm7, %v2592_v38, %v2594_v40 }
  0xcb   : > { %vm1004_vm15 = vcmp.lt.s32.totalorder %v2656_v28, 4  ;;  %v2701_v26 = vsel %vm538_vm11, %v532_v47, %v549_v13  ;;  %v1167_v57 = vsel %vm1157_vm14, %v1164_v18, %v1166_v62  ;;  %v1283_v55 = vshrl.u32 %v1282_v10, 23  ;;  %v346_v62 = vpop.f32.mrf.mxu3 }
  0xcc   : > { %vm825_vm0 = vcmp.gt.s32.totalorder %v824_v44, 0  ;;  %v2707_v59 = vsel %vm1157_vm14, %v1160_v23, %v1162_v30  ;;  %v1171_v11 = vsel %vm1157_vm14, %v1168_v31, %v1170_v43  ;;  %v1173_v37 = vand.u32 65535, %v2660_v63 }
  0xcd   : > { %3843 = vst [vmem:[#allocation11_spill] sm:$0xff] %v2707_v59  ;;  %v826_v0 = vsel %vm825_vm0, %v824_v44, 0  ;;  %v2715_v47 = vsel %vm1004_vm15, %v2662_v5, 920167782  ;;  %v1174_v13 = vshrl.u32 %v2660_v63, 16  ;;  %v1197_v44 = vand.u32 65535, %v1167_v57 }
  0xce   : > { %3844 = vst [vmem:[#allocation12_spill] sm:$0xff] %v2715_v47  ;;  %v821_v10 = vand.u32 8388607, %v3787_v8  ;;  %v828_v18 = vand.u32 31, %v826_v0  ;;  %v2725_v51 = vsel %vm1004_vm15, %v1000_v35, 1326507024  ;;  %v685_v2 = vshll.u32 %v3803_v56, %v2642_v45 }
  0xcf   : > { %3845 = vst [vmem:[#allocation13_spill] sm:$0xff] %v2725_v51  ;;  %v1198_v43 = vshrl.u32 %v1167_v57, 16  ;;  %v2727_v23 = vshrl.u32 %v671_v19, 5  ;;  %v1176_v30 = vshrl.u32 %v1171_v11, 16  ;;  %v2113_v4 = vadd.s32 4294967169, %v1283_v55 }
  0xd0   : > { %v829_v54 = vsub.s32 32, %v828_v18  ;;  %v1175_v8 = vand.u32 65535, %v1171_v11  ;;  %v2733_v60 = vshrl.u32 %v826_v0, 5  ;;  %v2736_v17 = vadd.f32 %v346_v62, %v2617_v12 }
  0xd1   : > { %v834_v27 = vshll.u32 %v3807_v7, %v828_v18  ;;  %v837_v19 = vshll.u32 %v3800_v9, %v828_v18  ;;  %v840_v31 = vshll.u32 %v3803_v56, %v828_v18  ;;  %v3847_v55 = vmov 920167782  }
  0xd2   : > { %3846 = vst [vmem:[#allocation14_spill] sm:$0xff] %v2736_v17  ;;  %v835_v35 = vshrl.u32 %v3800_v9, %v829_v54  ;;  %v838_v57 = vshrl.u32 %v3803_v56, %v829_v54  ;;  %v841_v11 = vshrl.u32 %v3847_v55, %v829_v54  ;;  %v843_v29 = vshll.u32 %v3847_v55, %v828_v18 }
  0xd3   : > { %v3848_v47 = vmov 1326507024   ;;  %v2746_v32 = vmul.u32 %v1176_v30, %v1173_v37  ;;  %v1289_v5 = vadd.s32 1, %v2113_v4  ;;  %v832_v51 = vshrl.u32 %v3807_v7, %v829_v54 }
  0xd4   : > { %v844_v0 = vshrl.u32 %v3848_v47, %v829_v54  ;;  %v836_v12 = vor.u32 %v835_v35, %v834_v27  ;;  %v839_v62 = vor.u32 %v838_v57, %v837_v19  ;;  %v842_v28 = vor.u32 %v841_v11, %v840_v31 }
  0xd5   : > { %3849 = vst [vmem:[#allocation15_spill] sm:$0xff] %v2746_v32  ;;  %vm846_vm1 = vcmp.lt.s32.totalorder %v2733_v60, 1  ;;  %v822_v9 = vor.u32 8388608, %v821_v10  ;;  %v3850_v63 = vmov 683565275   ;;  %vm849_vm2 = vcmp.lt.s32.totalorder %v2733_v60, 4 }
  0xd6   : > { %v845_v59 = vor.u32 %v844_v0, %v843_v29  ;;  %v831_v56 = vshll.u32 %v3850_v63, %v828_v18  ;;  %v858_v15 = vsel %vm846_vm1, %v836_v12, %v839_v62  ;;  %vm848_vm3 = vcmp.lt.s32.totalorder %v2733_v60, 3 }
  0xd7   : > { %vm1290_vm4 = vcmp.gt.s32.totalorder %v1289_v5, 0  ;;  %v1437_v4 = vand.u32 2139095040, %v2736_v17  ;;  %v2758_v31 = vmul.u32 %v1197_v44, %v1173_v37  ;;  %vm847_vm6 = vcmp.lt.s32.totalorder %v2733_v60, 2 }
  0xd8   : > { %v859_v27 = vsel %vm849_vm2, %v845_v59, 1326507024  ;;  %v1291_v10 = vsel %vm1290_vm4, %v1289_v5, 0  ;;  %v2763_v18 = vmul.u32 %v1198_v43, %v1173_v37  ;;  %v2765_v35 = vmul.u32 %v1197_v44, %v1174_v13 }
  0xd9   : > { %3851 = vst [vmem:[#allocation16_spill] sm:$0xff] %v2758_v31  ;;  %v860_v29 = vsel %vm848_vm3, %v842_v28, %v859_v27  ;;  %v833_v19 = vor.u32 %v832_v51, %v831_v56  ;;  %v1181_v59 = vshll.u32 %v2746_v32, 16  ;;  %v2770_v11 = vmul.u32 %v1198_v43, %v1174_v13 }
  0xda   : > { %3852 = vst [vmem:[#allocation17_spill] sm:$0xff] %v2763_v18  ;;  %v861_v57 = vsel %vm847_vm6, %v858_v15, %v860_v29  ;;  %v855_v0 = vsel %vm849_vm2, %v842_v28, 920167782  ;;  %v2774_v7 = vshll.u32 %v822_v9, 8  ;;  %v1177_v6 = vmul.u32 %v1175_v8, %v1173_v37 }
  0xdb   : > { %3853 = vst [vmem:[#allocation18_spill] sm:$0xff] %v2765_v35  ;;  %v2776_v27 = vmul.u32 %v1175_v8, %v1174_v13  ;;  %v2778_v5 = vand.u32 31, %v1291_v10  ;;  %v1438_v44 = vshrl.u32 %v1437_v4, 23  ;;  %v1180_v25 = vmul.u32 %v1176_v30, %v1174_v13 }
  0xdc   : > { %3854 = vst [vmem:[#allocation19_spill] sm:$0xff] %v2770_v11  ;;  %v686_v56 = vshrl.u32 %v3847_v55, %v2651_v3  ;;  %v851_v15 = vsel %vm849_vm2, %v839_v62, 2102212464  ;;  %v866_v51 = vshrl.u32 %v861_v57, 16  ;;  %vm694_vm8 = vcmp.lt.s32.totalorder %v2727_v23, 4 }
  0xdd   : > { %3855 = vst [vmem:[#allocation20_spill] sm:$0xff] %v2776_v27  ;;  %v830_v28 = vshrl.u32 %v3850_v63, %v829_v54  ;;  %v854_v9 = vsel %vm846_vm1, %v833_v19, %v836_v12  ;;  %v856_v8 = vsel %vm848_vm3, %v839_v62, %v855_v0  ;;  %vm2790_vm9 = vc.u32 %v1177_v6, %v1181_v59 }
  0xde   : > { %3856 = vst [vmem:[#allocation21_spill] sm:$0xff] %v2778_v5  ;;  %v863_v13 = vand.u32 65535, %v2774_v7  ;;  %v2796_v43 = vsub.s32 32, %v2778_v5  ;;  %v852_v4 = vsel %vm848_vm3, %v836_v12, %v851_v15  ;;  %v2805_v62 = vshll.u32 %v3847_v55, %v2778_v5 }
  0xdf   : > { %v850_v54 = vsel %vm846_vm1, %v830_v28, %v833_v19  ;;  %v2116_v29 = vadd.s32 4294967169, %v1438_v44  ;;  %v2807_v0 = vor.u32 %v686_v56, %v685_v2  ;;  %v857_v11 = vsel %vm847_vm6, %v854_v9, %v856_v8 }
  0xe0   : > { %3859 = vst [vmem:[#allocation22_spill] sm:$0xff] %v2796_v43  ;;  %v2811_v31 = vmul.u32 %v866_v51, %v863_v13  ;;  %v2815_v30 = vshrl.u32 %v3848_v47, %v2796_v43  ;;  %v2818_v28 = vadd.s32 %v1181_v59, %v1177_v6  ;;  %v865_v12 = vand.u32 65535, %v861_v57 }
  0xe1   : > { %3860 = vst [vmem:[#allocation23_spill] sm:$0xff] %v2805_v62  ;;  %v1444_v15 = vadd.s32 1, %v2116_v29  ;;  %v3864_v35 = vmov 0   ;;  %v2825_v44 = vsel %vm847_vm6, %v850_v54, %v852_v4  ;;  %v3865_v9 = vand.u32 2147483647, %v2736_v17 }
  0xe2   : > { %3861 = vst [vmem:[#allocation24_spill] sm:$0xff] %v2807_v0  ;;  %v1186_v2 = vsel %vm2790_vm9, 1, %v3864_v35  ;;  %v864_v19 = vshrl.u32 %v2774_v7, 16  ;;  %v887_v6 = vand.u32 65535, %v857_v11  ;;  %v888_v59 = vshrl.u32 %v857_v11, 16 }
  0xe3   : > { %3862 = vst [vmem:[#allocation25_spill] sm:$0xff] %v2815_v30  ;;  %v1441_v8 = vand.u32 8388607, %v3865_v9  ;;  %vm1445_vm10 = vcmp.gt.s32.totalorder %v1444_v15, 0  ;;  %v2835_v57 = vsel %vm694_vm8, %v2807_v0, 920167782  ;;  %v3867_v60 = vor.u32 %v2677_v22, %v2673_v61 }
  0xe4   : > { %3863 = vst [vmem:[#allocation26_spill] sm:$0xff] %v2818_v28  ;;  %v871_v54 = vshll.u32 %v2811_v31, 16  ;;  %v1446_v4 = vsel %vm1445_vm10, %v1444_v15, 0  ;;  %v2845_v29 = vadd.s32 %v1186_v2, %v1180_v25  ;;  %v2847_v9 = vmul.u32 %v865_v12, %v864_v19 }
  0xe5   : > { %3866 = vst [vmem:[#allocation27_spill] sm:$0xff] %v2835_v57  ;;  %v2842_v37 = vsel %vm694_vm8, %v3867_v60, 1326507024  ;;  %v1448_v56 = vand.u32 31, %v1446_v4  ;;  %v867_v17 = vmul.u32 %v865_v12, %v863_v13  ;;  %v870_v62 = vmul.u32 %v866_v51, %v864_v19 }
  0xe6   : > { %3868 = vst [vmem:[#allocation28_spill] sm:$0xff] %v2842_v37  ;;  %v2851_v30 = vshrl.u32 %v1291_v10, 5  ;;  %v1442_v61 = vor.u32 8388608, %v1441_v8  ;;  %v2853_v22 = vmul.u32 %v887_v6, %v863_v13  ;;  %v2855_v60 = vmul.u32 %v888_v59, %v863_v13 }
  0xe7   : > { %3869 = vst [vmem:[#allocation29_spill] sm:$0xff] %v2845_v29  ;;  %v2857_v18 = vmul.u32 %v887_v6, %v864_v19  ;;  %v1449_v15 = vsub.s32 32, %v1448_v56  ;;  %vm875_vm13 = vc.u32 %v867_v17, %v871_v54  ;;  %v3871_v25 = vmov 2102212464  }
  0xe8   : > { %3870 = vst [vmem:[#allocation30_spill] sm:$0xff] %v2851_v30  ;;  %v1460_v2 = vshll.u32 %v3871_v25, %v1448_v56  ;;  %v1463_v29 = vshll.u32 %v3847_v55, %v1448_v56  ;;  %vm537_vm14 = vcmp.lt.s32.totalorder %v2532_v52, 2  ;;  %v2863_v51 = vmul.u32 %v888_v59, %v864_v19 }
  0xe9   : > { %v2865_v10 = vshrl.u32 %v1446_v4, 5  ;;  %v551_v13 = vsel %vm537_vm14, %v2694_v21, %v2701_v26  ;;  %v1305_v8 = vshll.u32 %v3871_v25, %v2778_v5  ;;  %v1461_v6 = vshrl.u32 %v3847_v55, %v1449_v15 }
  0xea   : > { %v1464_v11 = vshrl.u32 %v3848_v47, %v1449_v15  ;;  %v2875_v30 = vshll.u32 %v1442_v61, 8  ;;  %v876_v12 = vsel %vm875_vm13, 1, %v3864_v35  ;;  %v1306_v19 = vshrl.u32 %v3847_v55, %v2796_v43 }
  0xeb   : > { %3872 = vst [vmem:[#allocation31_spill] sm:$0xff] %v2865_v10  ;;  %v3874_v59 = vmov 2131351028   ;;  %v520_v32 = vshrl.u32 %v3850_v63, %v2543_v58  ;;  %v1458_v21 = vshrl.u32 %v3871_v25, %v1449_v15  ;;  %v1462_v26 = vor.u32 %v1461_v6, %v1460_v2 }
  0xec   : > { %3873 = vst [vmem:[#allocation32_spill] sm:$0xff] %v2875_v30  ;;  %v1457_v4 = vshll.u32 %v3874_v59, %v1448_v56  ;;  %v1465_v5 = vor.u32 %v1464_v11, %v1463_v29  ;;  %v556_v28 = vshrl.u32 %v551_v13, 16  ;;  %vm1469_vm0 = vcmp.lt.s32.totalorder %v2865_v10, 4 }
  0xed   : > { %v541_v47 = vsel %vm539_vm12, %v2594_v40, 2102212464  ;;  %v547_v55 = vsel %vm537_vm14, %v2628_v20, %v2688_v1  ;;  %v555_v61 = vand.u32 65535, %v551_v13  ;;  %v1451_v43 = vshll.u32 %v3850_v63, %v1448_v56 }
  0xee   : > { %v3875_v58 = vmov 2475754826   ;;  %vm1468_vm1 = vcmp.lt.s32.totalorder %v2865_v10, 3  ;;  %v1479_v29 = vsel %vm1469_vm0, %v1465_v5, 1326507024  ;;  %v1455_v2 = vshrl.u32 %v3874_v59, %v1449_v15 }
  0xef   : > { %v1454_v27 = vshll.u32 %v3875_v58, %v1448_v56  ;;  %v1452_v11 = vshrl.u32 %v3875_v58, %v1449_v15  ;;  %v1480_v40 = vsel %vm1468_vm1, %v1462_v26, %v1479_v29  ;;  %v558_v6 = vmul.u32 %v556_v28, %v2530_v50 }
  0xf0   : > { %v2902_v20 = vadd.s32 %v871_v54, %v867_v17  ;;  %v1459_v1 = vor.u32 %v1458_v21, %v1457_v4  ;;  %v2905_v13 = vand.u32 65535, %v2875_v30  ;;  %v2908_v56 = vshrl.u32 %v2875_v30, 16 }
  0xf1   : > { %v2910_v57 = vadd.s32 %v876_v12, %v870_v62  ;;  %v540_v5 = vsel %vm536_vm7, %v520_v32, %v2587_v34  ;;  %v542_v29 = vsel %vm538_vm11, %v2592_v38, %v541_v47  ;;  %v559_v17 = vmul.u32 %v555_v61, %v2535_v53 }
  0xf2   : > { %v2919_v54 = vor.u32 %v1306_v19, %v1305_v8  ;;  %v561_v4 = vshll.u32 %v558_v6, 16  ;;  %v577_v21 = vand.u32 65535, %v547_v55  ;;  %v578_v0 = vshrl.u32 %v547_v55, 16 }
  0xf3   : > { %v1450_v30 = vshrl.u32 %v3850_v63, %v1449_v15  ;;  %v1453_v37 = vor.u32 %v1452_v11, %v1451_v43  ;;  %v1456_v62 = vor.u32 %v1455_v2, %v1454_v27  ;;  %v557_v12 = vmul.u32 %v555_v61, %v2530_v50 }
  0xf4   : > { %3876 = vst [vmem:[#allocation33_spill] sm:$0xff] %v2919_v54  ;;  %vm1466_vm12 = vcmp.lt.s32.totalorder %v2865_v10, 1  ;;  %vm1467_vm7 = vcmp.lt.s32.totalorder %v2865_v10, 2  ;;  %v1471_v32 = vsel %vm1469_vm0, %v1459_v1, 2102212464  ;;  %v2929_v34 = vsel %vm537_vm14, %v540_v5, %v542_v29 }
  0xf5   : > { %v1475_v38 = vsel %vm1469_vm0, %v1462_v26, 920167782  ;;  %v560_v15 = vmul.u32 %v556_v28, %v2535_v53  ;;  %v563_v43 = vshll.u32 %v559_v17, 16  ;;  %vm565_vm11 = vc.u32 %v557_v12, %v561_v4 }
  0xf6   : > { %v566_v27 = vsel %vm565_vm11, 1, %v3864_v35  ;;  %v567_v8 = vadd.s32 %v561_v4, %v557_v12  ;;  %v580_v19 = vmul.u32 %v578_v0, %v2530_v50  ;;  %v581_v47 = vmul.u32 %v577_v21, %v2535_v53 }
  0xf7   : > { %v2939_v55 = vsel %vm1466_vm12, %v1450_v30, %v1453_v37  ;;  %v1474_v52 = vsel %vm1466_vm12, %v1453_v37, %v1456_v62  ;;  %v568_v61 = vadd.s32 %v566_v27, %v560_v15  ;;  %v579_v26 = vmul.u32 %v577_v21, %v2530_v50 }
  0xf8   : > { %3877 = vst [vmem:[#allocation34_spill] sm:$0xff] %v2939_v55  ;;  %v2946_v28 = vsel %vm1468_vm1, %v1456_v62, %v1471_v32  ;;  %v1478_v11 = vsel %vm1466_vm12, %v1456_v62, %v1459_v1  ;;  %vm569_vm2 = vc.u32 %v567_v8, %v563_v43  ;;  %v583_v2 = vshll.u32 %v580_v19, 16 }
  0xf9   : > { %v1476_v5 = vsel %vm1468_vm1, %v1459_v1, %v1475_v38  ;;  %v562_v30 = vshrl.u32 %v558_v6, 16  ;;  %v570_v29 = vsel %vm569_vm2, 1, %v3864_v35  ;;  %v582_v37 = vmul.u32 %v578_v0, %v2535_v53 }
  0xfa   : > { %v572_v4 = vadd.s32 %v570_v29, %v568_v61  ;;  %v585_v12 = vshll.u32 %v581_v47, 16  ;;  %vm587_vm3 = vc.u32 %v579_v26, %v583_v2  ;;  %v589_v50 = vadd.s32 %v583_v2, %v579_v26 }
  0xfb   : > { %v2956_v21 = vsel %vm1467_vm7, %v1478_v11, %v1480_v40  ;;  %v564_v32 = vshrl.u32 %v559_v17, 16  ;;  %v588_v62 = vsel %vm587_vm3, 1, %v3864_v35  ;;  %v3830_v15 = vand.u32 2147483647, %v2501_v14 }
  0xfc   : > { %v573_v43 = vadd.s32 %v572_v4, %v562_v30  ;;  %v584_v1 = vshrl.u32 %v580_v19, 16  ;;  %v590_v6 = vadd.s32 %v588_v62, %v582_v37  ;;  %vm591_vm4 = vc.u32 %v589_v50, %v585_v12 }
  0xfd   : > { %v592_v38 = vsel %vm591_vm4, 1, %v3864_v35  ;;  %v2961_v53 = vadd.s32 %v589_v50, %v585_v12  ;;  %v356_v0 = vand.u32 8388607, %v3830_v15  ;;  %v366_v40 = vshll.u32 %v3850_v63, %v2518_v41 }
  0xfe   : > { %v2967_v27 = vadd.s32 %v573_v43, %v564_v32  ;;  %v594_v17 = vadd.s32 %v592_v38, %v590_v6  ;;  %v367_v8 = vshrl.u32 %v3875_v58, %v2527_v49  ;;  %v369_v19 = vshll.u32 %v3875_v58, %v2518_v41 }
  0xff   : > { %v357_v61 = vor.u32 8388608, %v356_v0  ;;  %v370_v26 = vshrl.u32 %v3874_v59, %v2527_v49  ;;  %v372_v11 = vshll.u32 %v3874_v59, %v2518_v41  ;;  %v373_v2 = vshrl.u32 %v3871_v25, %v2527_v49 }
 0x100   : > { %v2981_v30 = vsel %vm1467_vm7, %v1474_v52, %v1476_v5  ;;  %v586_v29 = vshrl.u32 %v581_v47, 16  ;;  %v595_v37 = vadd.s32 %v594_v17, %v584_v1  ;;  %v368_v4 = vor.u32 %v367_v8, %v366_v40 }
 0x101   : > { %v1485_v12 = vand.u32 65535, %v2956_v21  ;;  %vm599_vm6 = vc.u32 %v2967_v27, %v2961_v53  ;;  %v371_v50 = vor.u32 %v370_v26, %v369_v19  ;;  %v374_v32 = vor.u32 %v373_v2, %v372_v11 }
 0x102   : > { %v596_v62 = vadd.s32 %v595_v37, %v586_v29  ;;  %vm381_vm9 = vcmp.lt.s32.totalorder %v2524_v48, 1  ;;  %vm383_vm10 = vcmp.lt.s32.totalorder %v2524_v48, 3  ;;  %v2988_v41 = vshll.u32 %v357_v61, 8 }
 0x103   : > { %vm382_vm13 = vcmp.lt.s32.totalorder %v2524_v48, 2  ;;  %v389_v47 = vsel %vm381_vm9, %v368_v4, %v371_v50  ;;  %v391_v52 = vsel %vm383_vm10, %v374_v32, %v2601_v36  ;;  %v393_v5 = vsel %vm381_vm9, %v371_v50, %v374_v32 }
 0x104   : > { %v3831_v43 = vshrl.u32 %v2956_v21, 16  ;;  %v600_v1 = vadd.s32 1, %v596_v62  ;;  %v392_v6 = vsel %vm382_vm13, %v389_v47, %v391_v52  ;;  %v395_v38 = vsel %vm383_vm10, %v2576_v24, %v2605_v46 }
 0x105   : > { %v597_v0 = vmul.u32 %v2520_v42, %v2929_v34  ;;  %v396_v36 = vsel %vm382_vm13, %v393_v5, %v395_v38  ;;  %v398_v40 = vand.u32 65535, %v2988_v41  ;;  %v399_v17 = vshrl.u32 %v2988_v41, 16 }
 0x106   : > { %v601_v8 = vsel %vm599_vm6, %v600_v1, %v596_v62  ;;  %v400_v19 = vand.u32 65535, %v396_v36  ;;  %v401_v61 = vshrl.u32 %v396_v36, 16  ;;  %v422_v26 = vand.u32 65535, %v392_v6 }
 0x107   : > { %v602_v46 = vadd.s32 %v601_v8, %v597_v0  ;;  %v423_v42 = vshrl.u32 %v392_v6, 16  ;;  %v3017_v34 = vmul.u32 %v1485_v12, %v2905_v13  ;;  %v3022_v2 = vmul.u32 %v3831_v43, %v2905_v13 }
 0x108   : > { %v403_v29 = vmul.u32 %v401_v61, %v398_v40  ;;  %v404_v37 = vmul.u32 %v400_v19, %v399_v17  ;;  %v3025_v62 = vmul.u32 %v1485_v12, %v2908_v56  ;;  %v426_v5 = vmul.u32 %v422_v26, %v399_v17 }
 0x109   : > { %v603_v47 = vadd.s32 536870912, %v602_v46  ;;  %v425_v52 = vmul.u32 %v423_v42, %v398_v40  ;;  %v365_v1 = vshrl.u32 %v3850_v63, %v2527_v49  ;;  %v386_v6 = vsel %vm384_vm5, %v374_v32, 2102212464 }
 0x10a   : > { %v402_v38 = vmul.u32 %v400_v19, %v398_v40  ;;  %v406_v0 = vshll.u32 %v403_v29, 16  ;;  %v405_v8 = vmul.u32 %v401_v61, %v399_v17  ;;  %v424_v15 = vmul.u32 %v422_v26, %v398_v40 }
 0x10b   : > { %v604_v36 = vshrl.u32 %v603_v47, 30  ;;  %v428_v24 = vshll.u32 %v425_v52, 16  ;;  %vm506_vm14 = vcmp.lt.s32.totalorder %v2503_v16, 0  ;;  %v408_v11 = vshll.u32 %v404_v37, 16 }
 0x10c   : > { %vm410_vm0 = vc.u32 %v402_v38, %v406_v0  ;;  %v412_v12 = vadd.s32 %v406_v0, %v402_v38  ;;  %v427_v43 = vmul.u32 %v423_v42, %v399_v17  ;;  %v430_v55 = vshll.u32 %v426_v5, 16 }
 0x10d   : > { %v605_v54 = vshll.u32 %v604_v36, 30  ;;  %v411_v10 = vsel %vm410_vm0, 1, %v3864_v35  ;;  %vm432_vm1 = vc.u32 %v424_v15, %v428_v24  ;;  %v434_v19 = vadd.s32 %v428_v24, %v424_v15 }
 0x10e   : > { %v413_v49 = vadd.s32 %v411_v10, %v405_v8  ;;  %vm414_vm12 = vc.u32 %v412_v12, %v408_v11  ;;  %v433_v32 = vsel %vm432_vm1, 1, %v3864_v35  ;;  %v3878_v61 = vand.u32 2147483647, %v2503_v16 }
 0x10f   : > { %v606_v26 = vsub.s32 %v602_v46, %v605_v54  ;;  %v385_v17 = vsel %vm381_vm9, %v365_v1, %v368_v4  ;;  %v415_v42 = vsel %vm414_vm12, 1, %v3864_v35  ;;  %v435_v47 = vadd.s32 %v433_v32, %v427_v43 }
 0x110   : > { %vm3036_vm5 = vcmp.le.f32.partialorder %v3878_v61, 0.7853982  ;;  %v387_v10 = vsel %vm383_vm10, %v371_v50, %v386_v6  ;;  %v407_v11 = vshrl.u32 %v403_v29, 16  ;;  %v417_v38 = vadd.s32 %v415_v42, %v413_v49 }
 0x111   : > { %vm436_vm11 = vc.u32 %v434_v19, %v430_v55  ;;  %vm607_vm2 = vcmp.lt.s32.totalorder %v606_v26, 0  ;;  %v608_v15 = vsub.s32 0, %v606_v26  ;;  %v628_v24 = vsub.s32 4, %v604_v36 }
 0x112   : > { %v437_v0 = vsel %vm436_vm11, 1, %v3864_v35  ;;  %v409_v8 = vshrl.u32 %v404_v37, 16  ;;  %v418_v12 = vadd.s32 %v417_v38, %v407_v11  ;;  %v429_v54 = vshrl.u32 %v425_v52, 16 }
 0x113   : > { %v439_v46 = vadd.s32 %v437_v0, %v435_v47  ;;  %v609_v61 = vsel %vm607_vm2, %v608_v15, %v606_v26  ;;  %v388_v4 = vsel %vm382_vm13, %v385_v17, %v387_v10  ;;  %v431_v43 = vshrl.u32 %v426_v5, 16 }
 0x114   : > { %v3881_v1 = vshll.u32 %v2847_v9, 16  ;;  %v610_v50 = vclz %v609_v61  ;;  %v419_v29 = vadd.s32 %v418_v12, %v409_v8  ;;  %v3882_v37 = vshrl.u32 %v2956_v21, 16 }
 0x115   : > { %v440_v6 = vadd.s32 %v439_v46, %v429_v54  ;;  %v3883_v52 = vand.u32 65535, %v2981_v30  ;;  %v629_v5 = vsel %vm506_vm14, %v628_v24, %v604_v36  ;;  %v438_v17 = vadd.s32 %v434_v19, %v430_v55 }
 0x116   : > { %vm879_vm3 = vc.u32 %v2902_v20, %v3881_v1  ;;  %v3055_v32 = vmul.u32 %v3882_v37, %v2908_v56  ;;  %v3884_v20 = vshrl.u32 %v2981_v30, 16  ;;  %v2099_v47 = vadd.s32 4294967294, %v610_v50 }
 0x117   : > { %v880_v49 = vsel %vm879_vm3, 1, %v3864_v35  ;;  %v3060_v48 = vmul.u32 %v3883_v52, %v2905_v13  ;;  %v441_v10 = vadd.s32 %v440_v6, %v431_v43  ;;  %v598_v11 = vadd.s32 %v2961_v53, %v2967_v27 }
 0x118   : > { %v3067_v42 = vmul.u32 %v3884_v20, %v2905_v13  ;;  %v882_v21 = vadd.s32 %v880_v49, %v2910_v57  ;;  %v442_v38 = vmul.u32 %v2988_v41, %v388_v4  ;;  %vm444_vm4 = vc.u32 %v419_v29, %v438_v17 }
 0x119   : > { %v893_v15 = vshll.u32 %v2855_v60, 16  ;;  %vm2100_vm6 = vcmp.lt.s32.totalorder %v2099_v47, 0  ;;  %v631_v55 = vsel %vm3036_vm5, 0, %v629_v5  ;;  %v445_v36 = vadd.s32 1, %v441_v10 }
 0x11a   : > { %v872_v13 = vshrl.u32 %v2811_v31, 16  ;;  %v613_v19 = vsel %vm2100_vm6, 0, %v2099_v47  ;;  %v895_v24 = vshll.u32 %v2857_v18, 16  ;;  %v3885_v43 = vmov %v3883_v52 }
 0x11b   : > { %vm897_vm9 = vc.u32 %v2853_v22, %v893_v15  ;;  %v899_v57 = vadd.s32 %v893_v15, %v2853_v22  ;;  %v614_v53 = vsub.s32 32, %v613_v19  ;;  %v618_v27 = vsub.s32 4294967266, %v613_v19 }
 0x11c   : > { %v446_v41 = vsel %vm444_vm4, %v445_v36, %v441_v10  ;;  %v883_v0 = vadd.s32 %v882_v21, %v872_v13  ;;  %v615_v8 = vshll.u32 %v606_v26, %v613_v19  ;;  %v898_v54 = vsel %vm897_vm9, 1, %v3864_v35 }
 0x11d   : > { %v447_v12 = vadd.s32 %v446_v41, %v442_v38  ;;  %vm901_vm10 = vc.u32 %v899_v57, %v895_v24  ;;  %v616_v46 = vshrl.u32 %v598_v11, %v614_v53  ;;  %v619_v61 = vadd.s32 127, %v618_v27 }
 0x11e   : > { %v900_v31 = vadd.s32 %v898_v54, %v2863_v51  ;;  %v902_v4 = vsel %vm901_vm10, 1, %v3864_v35  ;;  %v3086_v1 = vmul.u32 %v3885_v43, %v2908_v56  ;;  %v648_v22 = vadd.s32 3, %v631_v55 }
 0x11f   : > { %v448_v50 = vadd.s32 536870912, %v447_v12  ;;  %v874_v6 = vshrl.u32 %v2847_v9, 16  ;;  %v617_v26 = vor.u32 %v616_v46, %v615_v8  ;;  %v620_v49 = vshll.u32 %v619_v61, 23 }
 0x120   : > { %v894_v37 = vshrl.u32 %v2855_v60, 16  ;;  %v904_v52 = vadd.s32 %v902_v4, %v900_v31  ;;  %v3886_v5 = vmov %v3884_v20  ;;  %vm351_vm13 = vcmp.lt.s32.totalorder %v2501_v14, 0 }
 0x121   : > { %v3093_v51 = vmul.u32 %v3886_v5, %v2908_v56  ;;  %v449_v20 = vshrl.u32 %v448_v50, 30  ;;  %v884_v47 = vadd.s32 %v883_v0, %v874_v6  ;;  %v621_v10 = vor.u32 4788187, %v620_v49 }
 0x122   : > { %v896_v21 = vshrl.u32 %v2857_v18, 16  ;;  %v905_v11 = vadd.s32 %v904_v52, %v894_v37  ;;  %v659_v9 = vand.u32 2147483647, %v2516_v39  ;;  %v3887_v38 = vand.u32 2147483647, %v2501_v14 }
 0x123   : > { %v450_v15 = vshll.u32 %v449_v20, 30  ;;  %v473_v30 = vsub.s32 4, %v449_v20  ;;  %v903_v56 = vadd.s32 %v899_v57, %v895_v24  ;;  %v622_v55 = vand.u32 2147483647, %v621_v10 }
 0x124   : > { %vm3100_vm0 = vcmp.le.f32.partialorder %v3887_v38, 0.7853982  ;;  %v624_v36 = vcvt.s32.f32 %v617_v26  ;;  %v3104_v13 = vand.u32 3, %v648_v22  ;;  %v906_v19 = vadd.s32 %v905_v11, %v896_v21 }
 0x125   : > { %v443_v53 = vadd.s32 %v438_v17, %v419_v29  ;;  %v3106_v27 = vsub.s32 %v447_v12, %v450_v15  ;;  %v474_v18 = vsel %vm351_vm13, %v473_v30, %v449_v20  ;;  %vm909_vm1 = vc.u32 %v884_v47, %v903_v56 }
 0x126   : > { %v625_v41 = vmul.f32 %v624_v36, %v622_v55  ;;  %v3110_v0 = vadd.s32 %v903_v56, %v884_v47  ;;  %v910_v8 = vadd.s32 1, %v906_v19  ;;  %v666_v54 = vand.u32 8388607, %v659_v9  ;;  %v3891_v56 = vld [vmem:[#allocation28_spill] sm:$0xff] }
 0x127   : > { %vm452_vm12 = vcmp.lt.s32.totalorder %v3106_v27, 0  ;;  %v453_v24 = vsub.s32 0, %v3106_v27  ;;  %v682_v29 = vshll.u32 %v3874_v59, %v2642_v45  ;;  %v683_v17 = vshrl.u32 %v3871_v25, %v2651_v3  ;;  %v3892_v55 = vld [vmem:[#allocation24_spill] sm:$0xff] }
 0x128   : > { %v626_v57 = vxor.u32 2147483648, %v625_v41  ;;  %v476_v12 = vsel %vm3100_vm0, 0, %v474_v18  ;;  %v911_v46 = vsel %vm909_vm1, %v910_v8, %v906_v19  ;;  %v677_v61 = vshrl.u32 %v3875_v58, %v2651_v3 }
 0x129   : > { %v454_v31 = vsel %vm452_vm12, %v453_v24, %v3106_v27  ;;  %v3890_v4 = vmul.u32 %v2774_v7, %v2825_v44  ;;  %v680_v22 = vshrl.u32 %v3874_v59, %v2651_v3  ;;  %v684_v50 = vor.u32 %v683_v17, %v682_v29 }
 0x12a   : > { %v627_v6 = vsel %vm506_vm14, %v626_v57, %v625_v41  ;;  %v455_v26 = vclz %v454_v31  ;;  %v675_v49 = vshrl.u32 %v3850_v63, %v2651_v3  ;;  %v676_v37 = vshll.u32 %v3850_v63, %v2642_v45 }
 0x12b   : > { %v912_v43 = vadd.s32 %v911_v46, %v3890_v4  ;;  %v3139_v52 = vsel %vm3036_vm5, %v2503_v16, %v627_v6  ;;  %v493_v7 = vadd.s32 3, %v476_v12  ;;  %v667_v44 = vor.u32 8388608, %v666_v54 }
 0x12c   : > { %v679_v5 = vshll.u32 %v3875_v58, %v2642_v45  ;;  %v632_v20 = vmul.f32 %v3139_v52, %v3139_v52  ;;  %v2096_v47 = vadd.s32 4294967294, %v455_v26  ;;  %v678_v21 = vor.u32 %v677_v61, %v676_v37 }
 0x12d   : > { %v913_v10 = vadd.s32 536870912, %v912_v43  ;;  %vm691_vm14 = vcmp.lt.s32.totalorder %v2727_v23, 1  ;;  %vm693_vm11 = vcmp.lt.s32.totalorder %v2727_v23, 3  ;;  %v696_v40 = vsel %vm694_vm8, %v684_v50, 2102212464 }
 0x12e   : > { %v681_v3 = vor.u32 %v680_v22, %v679_v5  ;;  %vm816_vm5 = vcmp.lt.s32.totalorder %v2585_v33, 0  ;;  %v633_v11 = vmul.f32 -0.001358992, %v632_v20  ;;  %v640_v38 = vmul.f32 -0.00019511016, %v632_v20 }
 0x12f   : > { %vm2097_vm2 = vcmp.lt.s32.totalorder %v2096_v47, 0  ;;  %v914_v45 = vshrl.u32 %v913_v10, 30  ;;  %v3150_v30 = vand.u32 3, %v493_v7  ;;  %vm692_vm3 = vcmp.lt.s32.totalorder %v2727_v23, 2 }
 0x130   : > { %v458_v15 = vsel %vm2097_vm2, 0, %v2096_v47  ;;  %v705_v36 = vsel %vm693_vm11, %v3892_v55, %v3891_v56  ;;  %v634_v19 = vadd.f32 0.041655596, %v633_v11  ;;  %v641_v18 = vadd.f32 0.008332121, %v640_v38 }
 0x131   : > { %v459_v41 = vsub.s32 32, %v458_v15  ;;  %v695_v8 = vsel %vm691_vm14, %v675_v49, %v678_v21  ;;  %v463_v54 = vsub.s32 4294967266, %v458_v15  ;;  %v915_v24 = vshll.u32 %v914_v45, 30 }
 0x132   : > { %v697_v29 = vsel %vm693_vm11, %v681_v3, %v696_v40  ;;  %v703_v17 = vsel %vm691_vm14, %v681_v3, %v684_v50  ;;  %v635_v57 = vmul.f32 %v634_v19, %v632_v20  ;;  %v642_v12 = vmul.f32 %v641_v18, %v632_v20  ;;  %v3896_v40 = vld [vmem:[#allocation27_spill] sm:$0xff] }
 0x133   : > { %v461_v46 = vshrl.u32 %v443_v53, %v459_v41  ;;  %v3893_v61 = vand.u32 2147483647, %v2585_v33  ;;  %v699_v4 = vsel %vm691_vm14, %v678_v21, %v681_v3  ;;  %v460_v22 = vshll.u32 %v3106_v27, %v458_v15 }
 0x134   : > { %v464_v6 = vadd.s32 127, %v463_v54  ;;  %v3172_v26 = vsub.s32 %v912_v43, %v915_v24  ;;  %v938_v49 = vsub.s32 4, %v914_v45  ;;  %v636_v37 = vadd.f32 -0.4999988, %v635_v57 }
 0x135   : > { %vm3165_vm8 = vcmp.le.f32.partialorder %v3893_v61, 0.7853982  ;;  %v643_v7 = vadd.f32 -0.16666654, %v642_v12  ;;  %vm654_vm4 = vcmp.eq.s32.totalorder %v3104_v13, 2  ;;  %v706_v53 = vsel %vm692_vm3, %v703_v17, %v705_v36 }
 0x136   : > { %v3177_v5 = vshll.u32 %v667_v44, 8  ;;  %vm651_vm6 = vcmp.eq.s32.totalorder %v3104_v13, 0  ;;  %v462_v47 = vor.u32 %v461_v46, %v460_v22  ;;  %v465_v10 = vshll.u32 %v464_v6, 23 }
 0x137   : > { %vm917_vm9 = vcmp.lt.s32.totalorder %v3172_v26, 0  ;;  %v918_v27 = vsub.s32 0, %v3172_v26  ;;  %v637_v43 = vmul.f32 %v636_v37, %v632_v20  ;;  %v644_v21 = vmul.f32 %v643_v7, %v632_v20 }
 0x138   : > { %vm650_vm10 = vcmp.lt.s32.totalorder %v3104_v13, 2  ;;  %v3185_v3 = vsel %vm692_vm3, %v695_v8, %v697_v29  ;;  %v701_v44 = vsel %vm693_vm11, %v684_v50, %v3896_v40  ;;  %vm647_vm1 = vweird.f32 %v2503_v16 }
 0x139   : > { %v466_v11 = vor.u32 4788187, %v465_v10  ;;  %v919_v38 = vsel %vm917_vm9, %v918_v27, %v3172_v26  ;;  %v3194_v15 = vsel %vm816_vm5, %v938_v49, %v914_v45  ;;  %v710_v20 = vand.u32 65535, %v706_v53 }
 0x13a   : > { %v638_v56 = vadd.f32 1.0, %v637_v43  ;;  %v645_v55 = vadd.f32 1.0, %v644_v21  ;;  %v920_v36 = vclz %v919_v38  ;;  %v711_v19 = vshrl.u32 %v706_v53, 16 }
 0x13b   : > { %v467_v18 = vand.u32 2147483647, %v466_v11  ;;  %v469_v41 = vcvt.s32.f32 %v462_v47  ;;  %v708_v8 = vand.u32 65535, %v3177_v5  ;;  %v709_v50 = vshrl.u32 %v3177_v5, 16 }
 0x13c   : > { %v646_v54 = vmul.f32 %v645_v55, %v3139_v52  ;;  %v655_v24 = vxor.u32 2147483648, %v638_v56  ;;  %v2105_v29 = vadd.s32 4294967294, %v920_v36  ;;  %v702_v17 = vsel %vm692_vm3, %v699_v4, %v701_v44 }
 0x13d   : > { %v470_v45 = vmul.f32 %v469_v41, %v467_v18  ;;  %v941_v57 = vsel %vm3165_vm8, 0, %v3194_v15  ;;  %v713_v12 = vmul.u32 %v711_v19, %v708_v8  ;;  %v714_v46 = vmul.u32 %v710_v20, %v709_v50  ;;  %v3900_v15 = vld [vmem:[#allocation15_spill] sm:$0xff] }
 0x13e   : > { %v652_v61 = vxor.u32 2147483648, %v646_v54  ;;  %vm2106_vm12 = vcmp.lt.s32.totalorder %v2105_v29, 0  ;;  %v712_v22 = vmul.u32 %v710_v20, %v708_v8  ;;  %v715_v6 = vmul.u32 %v711_v19, %v709_v50 }
 0x13f   : > { %v656_v49 = vsel %vm654_vm4, %v655_v24, %v646_v54  ;;  %v471_v52 = vxor.u32 2147483648, %v470_v45  ;;  %v923_v37 = vsel %vm2106_vm12, 0, %v2105_v29  ;;  %v716_v7 = vshll.u32 %v713_v12, 16 }
 0x140   : > { %v653_v23 = vsel %vm651_vm6, %v638_v56, %v652_v61  ;;  %v924_v4 = vsub.s32 32, %v923_v37  ;;  %v928_v53 = vsub.s32 4294967266, %v923_v37  ;;  %v732_v47 = vand.u32 65535, %v702_v17 }
 0x141   : > { %v657_v10 = vsel %vm650_vm10, %v653_v23, %v656_v49  ;;  %v472_v27 = vsel %vm351_vm13, %v471_v52, %v470_v45  ;;  %v925_v43 = vshll.u32 %v3172_v26, %v923_v37  ;;  %v718_v21 = vshll.u32 %v714_v46, 16 }
 0x142   : > { %v658_v40 = vsel %vm647_vm1, nan, %v657_v10  ;;  %v3218_v44 = vsel %vm3100_vm0, %v2501_v14, %v472_v27  ;;  %v926_v11 = vshrl.u32 %v3110_v0, %v924_v4  ;;  %v929_v38 = vadd.s32 127, %v928_v53 }
 0x143   : > { %1621 = vxpose.xlu0.b32.start [1/4] (short) %v658_v40, 128  ;;  %v477_v13 = vmul.f32 %v3218_v44, %v3218_v44  ;;  %vm720_vm14 = vc.u32 %v712_v22, %v716_v7  ;;  %v722_v20 = vadd.s32 %v716_v7, %v712_v22  ;;  %v733_v56 = vshrl.u32 %v702_v17, 16 }
 0x144   : > { %v927_v26 = vor.u32 %v926_v11, %v925_v43  ;;  %v930_v55 = vshll.u32 %v929_v38, 23  ;;  %v717_v36 = vshrl.u32 %v713_v12, 16  ;;  %v721_v16 = vsel %vm720_vm14, 1, %v3864_v35 }
 0x145   : > { %v478_v19 = vmul.f32 -0.001358992, %v477_v13  ;;  %v485_v18 = vmul.f32 -0.00019511016, %v477_v13  ;;  %v723_v60 = vadd.s32 %v721_v16, %v715_v6  ;;  %vm724_vm13 = vc.u32 %v722_v20, %v718_v21 }
 0x146   : > { %v931_v41 = vor.u32 4788187, %v930_v55  ;;  %v719_v54 = vshrl.u32 %v714_v46, 16  ;;  %v725_v0 = vsel %vm724_vm13, 1, %v3864_v35  ;;  %v735_v24 = vmul.u32 %v733_v56, %v708_v8 }
 0x147   : > { %v479_v29 = vadd.f32 0.041655596, %v478_v19  ;;  %v486_v45 = vadd.f32 0.008332121, %v485_v18  ;;  %v727_v61 = vadd.s32 %v725_v0, %v723_v60  ;;  %v736_v49 = vmul.u32 %v732_v47, %v709_v50 }
 0x148   : > { %v932_v22 = vand.u32 2147483647, %v931_v41  ;;  %v934_v17 = vcvt.s32.f32 %v927_v26  ;;  %v734_v52 = vmul.u32 %v732_v47, %v708_v8  ;;  %v738_v37 = vshll.u32 %v735_v24, 16 }
 0x149   : > { %v480_v12 = vmul.f32 %v479_v29, %v477_v13  ;;  %v487_v7 = vmul.f32 %v486_v45, %v477_v13  ;;  %v728_v23 = vadd.s32 %v727_v61, %v717_v36  ;;  %v737_v4 = vmul.u32 %v733_v56, %v709_v50  ;;  %v3897_v29 = vld [vmem:[#allocation20_spill] sm:$0xff]  ;;  %v3899_v61 = vld [vmem:[#allocation26_spill] sm:$0xff] }
 0x14a   : > { %v935_v53 = vmul.f32 %v934_v17, %v932_v22  ;;  %v740_v6 = vshll.u32 %v736_v49, 16  ;;  %vm742_vm0 = vc.u32 %v734_v52, %v738_v37  ;;  %v744_v10 = vadd.s32 %v738_v37, %v734_v52 }
 0x14b   : > { %v481_v46 = vadd.f32 -0.4999988, %v480_v12  ;;  %v488_v27 = vadd.f32 -0.16666654, %v487_v7  ;;  %v729_v43 = vadd.s32 %v728_v23, %v719_v54  ;;  %v743_v21 = vsel %vm742_vm0, 1, %v3864_v35  ;;  %v3902_v7 = vld [vmem:[#allocation17_spill] sm:$0xff] }
 0x14c   : > { %vm496_vm11 = vcmp.eq.s32.totalorder %v3150_v30, 0  ;;  %v936_v40 = vxor.u32 2147483648, %v935_v53  ;;  %v745_v11 = vadd.s32 %v743_v21, %v737_v4  ;;  %vm746_vm2 = vc.u32 %v744_v10, %v740_v6 }
 0x14d   : > { %v748_v8 = vadd.s32 %v744_v10, %v740_v6  ;;  %v482_v47 = vmul.f32 %v481_v46, %v477_v13  ;;  %v489_v38 = vmul.f32 %v488_v27, %v477_v13  ;;  %vm495_vm3 = vcmp.lt.s32.totalorder %v3150_v30, 2  ;;  %v3903_v46 = vld [vmem:[#allocation18_spill] sm:$0xff] }
 0x14e   : > { %v739_v50 = vshrl.u32 %v735_v24, 16  ;;  %v747_v20 = vsel %vm746_vm2, 1, %v3864_v35  ;;  %vm492_vm4 = vweird.f32 %v2501_v14  ;;  %v937_v56 = vsel %vm816_vm5, %v936_v40, %v935_v53 }
 0x14f   : > { %v749_v26 = vadd.s32 %v747_v20, %v745_v11  ;;  %v3232_v55 = vadd.s32 %v748_v8, %v729_v43  ;;  %vm754_vm6 = vc.u32 %v729_v43, %v748_v8  ;;  %v483_v36 = vadd.f32 1.0, %v482_v47  ;;  %v3905_v8 = vld [vmem:[#allocation19_spill] sm:$0xff] }
 0x150   : > { %v490_v16 = vadd.f32 1.0, %v489_v38  ;;  %vm499_vm9 = vcmp.eq.s32.totalorder %v3150_v30, 2  ;;  %v940_v13 = vsel %vm3165_vm8, %v2585_v33, %v937_v56  ;;  %v958_v18 = vadd.s32 3, %v941_v57  ;;  %v3904_v56 = vld [vmem:[#allocation16_spill] sm:$0xff] }
 0x151   : > { %v942_v19 = vmul.f32 %v940_v13, %v940_v13  ;;  %v741_v60 = vshrl.u32 %v736_v49, 16  ;;  %v750_v41 = vadd.s32 %v749_v26, %v739_v50  ;;  %v500_v0 = vxor.u32 2147483648, %v483_v36  ;;  %v3901_v49 = vld [vmem:[#allocation29_spill] sm:$0xff] }
 0x152   : > { %v491_v54 = vmul.f32 %v490_v16, %v3218_v44  ;;  %v752_v24 = vmul.u32 %v3177_v5, %v3185_v3  ;;  %v3898_v45 = vshll.u32 %v3897_v29, 16  ;;  %v1182_v57 = vshrl.u32 %v3900_v15, 16 }
 0x153   : > { %v943_v22 = vmul.f32 -0.001358992, %v942_v19  ;;  %v950_v17 = vmul.f32 -0.00019511016, %v942_v19  ;;  %v751_v52 = vadd.s32 %v750_v41, %v741_v60  ;;  %v1203_v44 = vshll.u32 %v3902_v7, 16 }
 0x154   : > { %vm1189_vm5 = vc.u32 %v3899_v61, %v3898_v45  ;;  %v497_v37 = vxor.u32 2147483648, %v491_v54  ;;  %v1184_v5 = vshrl.u32 %v3897_v29, 16  ;;  %v501_v6 = vsel %vm499_vm9, %v500_v0, %v491_v54 }
 0x155   : > { %v1190_v31 = vsel %vm1189_vm5, 1, %v3864_v35  ;;  %v944_v23 = vadd.f32 0.041655596, %v943_v22  ;;  %v951_v4 = vadd.f32 0.008332121, %v950_v17  ;;  %v755_v53 = vadd.s32 1, %v751_v52 }
 0x156   : > { %v1192_v12 = vadd.s32 %v1190_v31, %v3901_v49  ;;  %v498_v3 = vsel %vm496_vm11, %v483_v36, %v497_v37  ;;  %v1205_v27 = vshll.u32 %v3903_v46, 16  ;;  %vm1207_vm8 = vc.u32 %v3904_v56, %v1203_v44 }
 0x157   : > { %v502_v21 = vsel %vm495_vm3, %v498_v3, %v501_v6  ;;  %v945_v40 = vmul.f32 %v944_v23, %v942_v19  ;;  %v952_v11 = vmul.f32 %v951_v4, %v942_v19  ;;  %v756_v47 = vsel %vm754_vm6, %v755_v53, %v751_v52 }
 0x158   : > { %v1193_v10 = vadd.s32 %v1192_v12, %v1182_v57  ;;  %v503_v38 = vsel %vm492_vm4, nan, %v502_v21  ;;  %v757_v50 = vadd.s32 %v756_v47, %v752_v24  ;;  %v1208_v16 = vsel %vm1207_vm8, 1, %v3864_v35 }
 0x159   : > { %1589 = vxpose.xlu2.b32.start [1/4] (short) %v503_v38, 128  ;;  %v946_v26 = vadd.f32 -0.4999988, %v945_v40  ;;  %v953_v36 = vadd.f32 -0.16666654, %v952_v11  ;;  %v1209_v60 = vadd.s32 %v1203_v44, %v3904_v56  ;;  %v1491_v30 = vshll.u32 %v3022_v2, 16  ;;  %v3910_v40 = vld [vmem:[#allocation6_spill] sm:$0xff] }
 0x15a   : > { %v1194_v20 = vadd.s32 %v1193_v10, %v1184_v5  ;;  %v1493_v41 = vshll.u32 %v3025_v62, 16  ;;  %v758_v43 = vadd.s32 536870912, %v757_v50  ;;  %v1210_v54 = vadd.s32 %v1208_v16, %v3905_v8  ;;  %v3909_v10 = vld [vmem:[#allocation5_spill] sm:$0xff] }
 0x15b   : > { %v947_v14 = vmul.f32 %v946_v26, %v942_v19  ;;  %v954_v0 = vmul.f32 %v953_v36, %v942_v19  ;;  %vm1211_vm10 = vc.u32 %v1209_v60, %v1205_v27  ;;  %v1213_v24 = vadd.s32 %v1209_v60, %v1205_v27  ;;  %v3908_v19 = vld [vmem:[#allocation3_spill] sm:$0xff] }
 0x15c   : > { %v959_v29 = vand.u32 3, %v958_v18  ;;  %v759_v45 = vshrl.u32 %v758_v43, 30  ;;  %v1204_v61 = vshrl.u32 %v3902_v7, 16  ;;  %v1212_v22 = vsel %vm1211_vm10, 1, %v3864_v35 }
 0x15d   : > { %v948_v17 = vadd.f32 1.0, %v947_v14  ;;  %v955_v52 = vadd.f32 1.0, %v954_v0  ;;  %v1214_v31 = vadd.s32 %v1212_v22, %v1210_v54  ;;  %v3271_v37 = vadd.s32 %v1213_v24, %v1194_v20  ;;  %v3911_v54 = vld [vmem:[#allocation9_spill] sm:$0xff]  ;;  %v3912_v14 = vld [vmem:[#allocation11_spill] sm:$0xff] }
 0x15e   : > { %vm3274_vm1 = vc.u32 %v3017_v34, %v1491_v30  ;;  %v760_v57 = vshll.u32 %v759_v45, 30  ;;  %vm1219_vm12 = vc.u32 %v1194_v20, %v1213_v24  ;;  %v969_v49 = vand.u32 2147483647, %v3908_v19 }
 0x15f   : > { %v956_v18 = vmul.f32 %v955_v52, %v940_v13  ;;  %v965_v12 = vxor.u32 2147483648, %v948_v17  ;;  %v1206_v7 = vshrl.u32 %v3903_v46, 16  ;;  %v1215_v44 = vadd.s32 %v1214_v31, %v1204_v61  ;;  %v3916_v31 = vld [vmem:[#allocation10_spill] sm:$0xff] }
 0x160   : > { %vm957_vm14 = vweird.f32 %v2585_v33  ;;  %vm960_vm13 = vcmp.lt.s32.totalorder %v959_v29, 2  ;;  %vm961_vm0 = vcmp.eq.s32.totalorder %v959_v29, 0  ;;  %v761_v23 = vsub.s32 %v757_v50, %v760_v57 }
 0x161   : > { %v962_v4 = vxor.u32 2147483648, %v956_v18  ;;  %vm964_vm11 = vcmp.eq.s32.totalorder %v959_v29, 2  ;;  %v783_v53 = vsub.s32 4, %v759_v45  ;;  %v1216_v5 = vadd.s32 %v1215_v44, %v1206_v7 }
 0x162   : > { %vm762_vm2 = vcmp.lt.s32.totalorder %v761_v23, 0  ;;  %v763_v3 = vsub.s32 0, %v761_v23  ;;  %v976_v6 = vand.u32 8388607, %v969_v49  ;;  %v986_v13 = vshll.u32 %v3850_v63, %v3909_v10 }
 0x163   : > { %v963_v27 = vsel %vm961_vm0, %v948_v17, %v962_v4  ;;  %v966_v46 = vsel %vm964_vm11, %v965_v12, %v956_v18  ;;  %v1220_v21 = vadd.s32 1, %v1216_v5  ;;  %v987_v11 = vshrl.u32 %v3875_v58, %v3910_v40 }
 0x164   : > { %v967_v47 = vsel %vm960_vm13, %v963_v27, %v966_v46  ;;  %v764_v38 = vsel %vm762_vm2, %v763_v3, %v761_v23  ;;  %v989_v50 = vshll.u32 %v3875_v58, %v3909_v10  ;;  %v990_v56 = vshrl.u32 %v3874_v59, %v3910_v40 }
 0x165   : > { %v968_v26 = vsel %vm957_vm14, nan, %v967_v47  ;;  %vm661_vm3 = vcmp.lt.s32.totalorder %v2516_v39, 0  ;;  %v765_v36 = vclz %v764_v38  ;;  %v1221_v16 = vsel %vm1219_vm12, %v1220_v21, %v1216_v5  ;;  %v3920_v21 = vld [vmem:[#allocation12_spill] sm:$0xff] }
 0x166   : > { %v1496_v60 = vsel %vm3274_vm1, 1, %v3864_v35  ;;  %v3299_v43 = vadd.s32 %v1491_v30, %v3017_v34  ;;  %1622 = vxpose.xlu0.b32.cont [2/4] (short) %v968_v26, 128  ;;  %v784_v8 = vsel %vm661_vm3, %v783_v53, %v759_v45  ;;  %v3913_v33 = vmul.u32 %v3911_v54, %v3912_v14  ;;  %v3914_v30 = vld [vmem:[#allocation8_spill] sm:$0xff]  ;;  %v3915_v45 = vld [vmem:[#allocation13_spill] sm:$0xff] }
 0x167   : > { %v2102_v29 = vadd.s32 4294967294, %v765_v36  ;;  %v977_v61 = vor.u32 8388608, %v976_v6  ;;  %v992_v20 = vshll.u32 %v3874_v59, %v3909_v10  ;;  %v993_v24 = vshrl.u32 %v3871_v25, %v3910_v40  ;;  %v3919_v10 = vld [vmem:[#allocation4_spill] sm:$0xff] }
 0x168   : > { %v1222_v0 = vadd.s32 %v1221_v16, %v3913_v33  ;;  %v988_v17 = vor.u32 %v987_v11, %v986_v13  ;;  %v991_v34 = vor.u32 %v990_v56, %v989_v50  ;;  %vm1003_vm4 = vcmp.lt.s32.totalorder %v3914_v30, 3 }
 0x169   : > { %vm2103_vm6 = vcmp.lt.s32.totalorder %v2102_v29, 0  ;;  %v994_v52 = vor.u32 %v993_v24, %v992_v20  ;;  %vm1001_vm9 = vcmp.lt.s32.totalorder %v3914_v30, 1  ;;  %v1015_v15 = vsel %vm1003_vm4, %v3916_v31, %v3915_v45 }
 0x16a   : > { %v1223_v22 = vadd.s32 536870912, %v1222_v0  ;;  %vm3318_vm5 = vcmp.le.f32.partialorder %v659_v9, 0.7853982  ;;  %v768_v18 = vsel %vm2103_vm6, 0, %v2102_v29  ;;  %v985_v7 = vshrl.u32 %v3850_v63, %v3910_v40 }
 0x16b   : > { %v769_v44 = vsub.s32 32, %v768_v18  ;;  %v773_v4 = vsub.s32 4294967266, %v768_v18  ;;  %v786_v53 = vsel %vm3318_vm5, 0, %v784_v8  ;;  %vm1002_vm8 = vcmp.lt.s32.totalorder %v3914_v30, 2 }
 0x16c   : > { %v1224_v12 = vshrl.u32 %v1223_v22, 30  ;;  %v770_v5 = vshll.u32 %v761_v23, %v768_v18  ;;  %v1009_v9 = vsel %vm1001_vm9, %v988_v17, %v991_v34  ;;  %v3329_v6 = vshll.u32 %v977_v61, 8 }
 0x16d   : > { %vm1126_vm10 = vcmp.lt.s32.totalorder %v3919_v10, 0  ;;  %v771_v13 = vshrl.u32 %v3232_v55, %v769_v44  ;;  %v774_v27 = vadd.s32 127, %v773_v4  ;;  %v1006_v46 = vsel %vm1004_vm15, %v994_v52, 2102212464 }
 0x16e   : > { %v1225_v3 = vshll.u32 %v1224_v12, 30  ;;  %v1011_v40 = vsel %vm1003_vm4, %v994_v52, %v3920_v21  ;;  %v3339_v23 = vadd.s32 %v1496_v60, %v3055_v32  ;;  %v803_v11 = vadd.s32 3, %v786_v53 }
 0x16f   : > { %v1013_v38 = vsel %vm1001_vm9, %v991_v34, %v994_v52  ;;  %v772_v50 = vor.u32 %v771_v13, %v770_v5  ;;  %v775_v56 = vshll.u32 %v774_v27, 23  ;;  %v1005_v55 = vsel %vm1001_vm9, %v985_v7, %v988_v17 }
 0x170   : > { %v1226_v47 = vsub.s32 %v1222_v0, %v1225_v3  ;;  %v1016_v26 = vsel %vm1002_vm8, %v1013_v38, %v1015_v15  ;;  %v1007_v16 = vsel %vm1003_vm4, %v991_v34, %v1006_v46  ;;  %v1012_v32 = vsel %vm1002_vm8, %v1009_v9, %v1011_v40 }
 0x171   : > { %v776_v60 = vor.u32 4788187, %v775_v56  ;;  %v1018_v8 = vand.u32 65535, %v3329_v6  ;;  %v1020_v54 = vand.u32 65535, %v1016_v26  ;;  %v1021_v14 = vshrl.u32 %v1016_v26, 16 }
 0x172   : > { %vm1227_vm15 = vcmp.lt.s32.totalorder %v1226_v47, 0  ;;  %v1228_v36 = vsub.s32 0, %v1226_v47  ;;  %v3352_v33 = vand.u32 3, %v803_v11  ;;  %v1248_v29 = vsub.s32 4, %v1224_v12 }
 0x173   : > { %v1019_v61 = vshrl.u32 %v3329_v6, 16  ;;  %v777_v20 = vand.u32 2147483647, %v776_v60  ;;  %v779_v24 = vcvt.s32.f32 %v772_v50  ;;  %v1023_v17 = vmul.u32 %v1021_v14, %v1018_v8 }
 0x174   : > { %v1229_v0 = vsel %vm1227_vm15, %v1228_v36, %v1226_v47  ;;  %v3357_v34 = vsel %vm1002_vm8, %v1005_v55, %v1007_v16  ;;  %v1042_v45 = vand.u32 65535, %v1012_v32  ;;  %v1043_v31 = vshrl.u32 %v1012_v32, 16 }
 0x175   : > { %v1230_v22 = vclz %v1229_v0  ;;  %v1024_v52 = vmul.u32 %v1020_v54, %v1019_v61  ;;  %v780_v15 = vmul.f32 %v779_v24, %v777_v20  ;;  %v1022_v7 = vmul.u32 %v1020_v54, %v1018_v8 }
 0x176   : > { %v1026_v44 = vshll.u32 %v1023_v17, 16  ;;  %v3361_v4 = vsel %vm1126_vm10, %v1248_v29, %v1224_v12  ;;  %v1025_v53 = vmul.u32 %v1021_v14, %v1019_v61  ;;  %v1027_v5 = vshrl.u32 %v1023_v17, 16 }
 0x177   : > { %v2111_v18 = vadd.s32 4294967294, %v1230_v22  ;;  %v1028_v3 = vshll.u32 %v1024_v52, 16  ;;  %v781_v9 = vxor.u32 2147483648, %v780_v15  ;;  %v1029_v27 = vshrl.u32 %v1024_v52, 16 }
 0x178   : > { %vm1030_vm12 = vc.u32 %v1022_v7, %v1026_v44  ;;  %v1032_v30 = vadd.s32 %v1026_v44, %v1022_v7  ;;  %v1045_v21 = vmul.u32 %v1043_v31, %v1018_v8  ;;  %v1046_v50 = vmul.u32 %v1042_v45, %v1019_v61 }
 0x179   : > { %vm2112_vm1 = vcmp.lt.s32.totalorder %v2111_v18, 0  ;;  %v1031_v46 = vsel %vm1030_vm12, 1, %v3864_v35  ;;  %v782_v40 = vsel %vm661_vm3, %v781_v9, %v780_v15  ;;  %v3921_v36 = vand.u32 2147483647, %v3919_v10 }
 0x17a   : > { %v1233_v13 = vsel %vm2112_vm1, 0, %v2111_v18  ;;  %v3369_v12 = vsel %vm3318_vm5, %v2516_v39, %v782_v40  ;;  %v1033_v55 = vadd.s32 %v1031_v46, %v1025_v53  ;;  %vm1034_vm14 = vc.u32 %v1032_v30, %v1028_v3 }
 0x17b   : > { %v1234_v11 = vsub.s32 32, %v1233_v13  ;;  %v1238_v38 = vsub.s32 4294967266, %v1233_v13  ;;  %v1235_v56 = vshll.u32 %v1226_v47, %v1233_v13  ;;  %v787_v26 = vmul.f32 %v3369_v12, %v3369_v12 }
 0x17c   : > { %vm3375_vm13 = vcmp.le.f32.partialorder %v3921_v36, 0.7853982  ;;  %v1035_v54 = vsel %vm1034_vm14, 1, %v3864_v35  ;;  %v1044_v14 = vmul.u32 %v1042_v45, %v1018_v8  ;;  %v1047_v0 = vmul.u32 %v1043_v31, %v1019_v61 }
 0x17d   : > { %v1236_v32 = vshrl.u32 %v3271_v37, %v1234_v11  ;;  %v1239_v60 = vadd.s32 127, %v1238_v38  ;;  %v1037_v57 = vadd.s32 %v1035_v54, %v1033_v55  ;;  %v1048_v47 = vshll.u32 %v1045_v21, 16 }
 0x17e   : > { %v788_v29 = vmul.f32 -0.001358992, %v787_v26  ;;  %v795_v20 = vmul.f32 -0.00019511016, %v787_v26  ;;  %v1050_v52 = vshll.u32 %v1046_v50, 16  ;;  %v1049_v30 = vshrl.u32 %v1045_v21, 16 }
 0x17f   : > { %v1237_v24 = vor.u32 %v1236_v32, %v1235_v56  ;;  %v1240_v22 = vshll.u32 %v1239_v60, 23  ;;  %v1038_v17 = vadd.s32 %v1037_v57, %v1027_v5  ;;  %vm1052_vm0 = vc.u32 %v1044_v14, %v1048_v47 }
 0x180   : > { %v1054_v15 = vadd.s32 %v1048_v47, %v1044_v14  ;;  %v789_v18 = vadd.f32 0.041655596, %v788_v29  ;;  %v796_v7 = vadd.f32 0.008332121, %v795_v20  ;;  %v1053_v3 = vsel %vm1052_vm0, 1, %v3864_v35 }
 0x181   : > { %v1241_v44 = vor.u32 4788187, %v1240_v22  ;;  %v1244_v53 = vcvt.s32.f32 %v1237_v24  ;;  %v1039_v37 = vadd.s32 %v1038_v17, %v1029_v27  ;;  %v1055_v31 = vadd.s32 %v1053_v3, %v1047_v0 }
 0x182   : > { %vm1056_vm11 = vc.u32 %v1054_v15, %v1050_v52  ;;  %v1058_v9 = vadd.s32 %v1054_v15, %v1050_v52  ;;  %v790_v8 = vmul.f32 %v789_v18, %v787_v26  ;;  %v797_v61 = vmul.f32 %v796_v7, %v787_v26 }
 0x183   : > { %v1242_v45 = vand.u32 2147483647, %v1241_v44  ;;  %v1057_v13 = vsel %vm1056_vm11, 1, %v3864_v35  ;;  %vm806_vm3 = vcmp.eq.s32.totalorder %v3352_v33, 0  ;;  %vm809_vm4 = vcmp.eq.s32.totalorder %v3352_v33, 2 }
 0x184   : > { %v3383_v5 = vadd.s32 %v1058_v9, %v1039_v37  ;;  %vm1064_vm2 = vc.u32 %v1039_v37, %v1058_v9  ;;  %v791_v46 = vadd.f32 -0.4999988, %v790_v8  ;;  %v798_v40 = vadd.f32 -0.16666654, %v797_v61 }
 0x185   : > { %v1245_v11 = vmul.f32 %v1244_v53, %v1242_v45  ;;  %v1059_v38 = vadd.s32 %v1057_v13, %v1055_v31  ;;  %v1251_v27 = vsel %vm3375_vm13, 0, %v3361_v4  ;;  %v1051_v56 = vshrl.u32 %v1046_v50, 16 }
 0x186   : > { %vm1499_vm6 = vc.u32 %v3299_v43, %v1493_v41  ;;  %v792_v21 = vmul.f32 %v791_v46, %v787_v26  ;;  %v799_v55 = vmul.f32 %v798_v40, %v787_v26  ;;  %vm805_vm9 = vcmp.lt.s32.totalorder %v3352_v33, 2  ;;  %v3924_v33 = vld [vmem:[#allocation34_spill] sm:$0xff] }
 0x187   : > { %v1246_v36 = vxor.u32 2147483648, %v1245_v11  ;;  %v1060_v32 = vadd.s32 %v1059_v38, %v1049_v30  ;;  %vm802_vm5 = vweird.f32 %v2516_v39  ;;  %v1062_v60 = vmul.u32 %v3329_v6, %v3357_v34 }
 0x188   : > { %v1492_v54 = vshrl.u32 %v3022_v2, 16  ;;  %v1500_v4 = vsel %vm1499_vm6, 1, %v3864_v35  ;;  %v1513_v50 = vshll.u32 %v3067_v42, 16  ;;  %v793_v57 = vadd.f32 1.0, %v792_v21 }
 0x189   : > { %v800_v14 = vadd.f32 1.0, %v799_v55  ;;  %v1247_v41 = vsel %vm1126_vm10, %v1246_v36, %v1245_v11  ;;  %v1061_v43 = vadd.s32 %v1060_v32, %v1051_v56  ;;  %v1494_v0 = vshrl.u32 %v3025_v62, 16  ;;  %v3926_v36 = vld [vmem:[#allocation30_spill] sm:$0xff] }
 0x18a   : > { %v1250_v26 = vsel %vm3375_vm13, %v3919_v10, %v1247_v41  ;;  %v1502_v6 = vadd.s32 %v1500_v4, %v3339_v23  ;;  %vm1517_vm8 = vc.u32 %v3060_v48, %v1513_v50  ;;  %v810_v34 = vxor.u32 2147483648, %v793_v57  ;;  %v3931_v41 = vld [vmem:[#allocation32_spill] sm:$0xff] }
 0x18b   : > { %v801_v2 = vmul.f32 %v800_v14, %v3369_v12  ;;  %v1252_v47 = vmul.f32 %v1250_v26, %v1250_v26  ;;  %v1065_v29 = vadd.s32 1, %v1061_v43  ;;  %v1515_v24 = vshll.u32 %v3086_v1, 16 }
 0x18c   : > { %v1503_v20 = vadd.s32 %v1502_v6, %v1492_v54  ;;  %v1518_v22 = vsel %vm1517_vm8, 1, %v3864_v35  ;;  %v1519_v17 = vadd.s32 %v1513_v50, %v3060_v48  ;;  %v1268_v8 = vadd.s32 3, %v1251_v27  ;;  %v3927_v54 = vld [vmem:[#allocation33_spill] sm:$0xff] }
 0x18d   : > { %v807_v16 = vxor.u32 2147483648, %v801_v2  ;;  %v811_v62 = vsel %vm809_vm4, %v810_v34, %v801_v2  ;;  %v1253_v52 = vmul.f32 -0.001358992, %v1252_v47  ;;  %v1260_v23 = vmul.f32 -0.00019511016, %v1252_v47  ;;  %v3928_v50 = vld [vmem:[#allocation25_spill] sm:$0xff] }
 0x18e   : > { %v1066_v15 = vsel %vm1064_vm2, %v1065_v29, %v1061_v43  ;;  %v1504_v18 = vadd.s32 %v1503_v20, %v1494_v0  ;;  %v1520_v12 = vadd.s32 %v1518_v22, %v3093_v51  ;;  %vm1521_vm10 = vc.u32 %v1519_v17, %v1515_v24 }
 0x18f   : > { %v808_v7 = vsel %vm806_vm3, %v793_v57, %v807_v16  ;;  %v1254_v44 = vadd.f32 0.041655596, %v1253_v52  ;;  %v1261_v53 = vadd.f32 0.008332121, %v1260_v23  ;;  %v1067_v3 = vadd.s32 %v1066_v15, %v1062_v60  ;;  %v3929_v57 = vld [vmem:[#allocation23_spill] sm:$0xff] }
 0x190   : > { %v812_v48 = vsel %vm805_vm9, %v808_v7, %v811_v62  ;;  %v1522_v61 = vsel %vm1521_vm10, 1, %v3864_v35  ;;  %v1523_v45 = vadd.s32 %v1519_v17, %v1515_v24  ;;  %v1514_v30 = vshrl.u32 %v3067_v42, 16  ;;  %v3932_v17 = vld [vmem:[#allocation7_spill] sm:$0xff]  ;;  %v3933_v62 = vld [vmem:[#allocation21_spill] sm:$0xff] }
 0x191   : > { %v813_v37 = vsel %vm802_vm5, nan, %v812_v48  ;;  %v1255_v9 = vmul.f32 %v1254_v44, %v1252_v47  ;;  %v1262_v31 = vmul.f32 %v1261_v53, %v1252_v47  ;;  %v1068_v51 = vadd.s32 536870912, %v1067_v3  ;;  %v3934_v53 = vld [vmem:[#allocation22_spill] sm:$0xff] }
 0x192   : > { %1590 = vxpose.xlu2.b32.cont [2/4] (short) %v813_v37, 128  ;;  %v1524_v13 = vadd.s32 %v1522_v61, %v1520_v12  ;;  %v3424_v46 = vadd.s32 %v1523_v45, %v1504_v18  ;;  %vm1529_vm15 = vc.u32 %v1504_v18, %v1523_v45  ;;  %v1473_v11 = vsel %vm1467_vm7, %v3924_v33, %v2946_v28 }
 0x193   : > { %v1256_v38 = vadd.f32 -0.4999988, %v1255_v9  ;;  %v1263_v27 = vadd.f32 -0.16666654, %v1262_v31  ;;  %v1069_v56 = vshrl.u32 %v1068_v51, 30  ;;  %v1269_v39 = vand.u32 3, %v1268_v8 }
 0x194   : > { %v1516_v21 = vshrl.u32 %v3086_v1, 16  ;;  %v1525_v55 = vadd.s32 %v1524_v13, %v1514_v30  ;;  %vm1314_vm1 = vcmp.lt.s32.totalorder %v3926_v36, 4  ;;  %v3930_v28 = vor.u32 %v3928_v50, %v3929_v57 }
 0x195   : > { %v1257_v32 = vmul.f32 %v1256_v38, %v1252_v47  ;;  %v1264_v42 = vmul.f32 %v1263_v27, %v1252_v47  ;;  %v1070_v60 = vshll.u32 %v1069_v56, 30  ;;  %v3435_v4 = vsel %vm1314_vm1, %v3927_v54, 920167782 }
 0x196   : > { %v1324_v14 = vsel %vm1314_vm1, %v3930_v28, 1326507024  ;;  %v1527_v43 = vmul.u32 %v3931_v41, %v1473_v11  ;;  %v1526_v1 = vadd.s32 %v1525_v55, %v1516_v21  ;;  %vm1267_vm7 = vweird.f32 %v3919_v10 }
 0x197   : > { %v1258_v0 = vadd.f32 1.0, %v1257_v32  ;;  %v1265_v6 = vadd.f32 1.0, %v1264_v42  ;;  %v1071_v2 = vsub.s32 %v1067_v3, %v1070_v60  ;;  %vm1270_vm12 = vcmp.lt.s32.totalorder %v1269_v39, 2 }
 0x198   : > { %vm1271_vm14 = vcmp.eq.s32.totalorder %v1269_v39, 0  ;;  %vm1274_vm13 = vcmp.eq.s32.totalorder %v1269_v39, 2  ;;  %v1530_v34 = vadd.s32 1, %v1526_v1  ;;  %v1093_v24 = vsub.s32 4, %v1069_v56 }
 0x199   : > { %v1266_v47 = vmul.f32 %v1265_v6, %v1250_v26  ;;  %v1275_v29 = vxor.u32 2147483648, %v1258_v0  ;;  %vm1072_vm0 = vcmp.lt.s32.totalorder %v1071_v2, 0  ;;  %v1073_v20 = vsub.s32 0, %v1071_v2 }
 0x19a   : > { %v1531_v22 = vsel %vm1529_vm15, %v1530_v34, %v1526_v1  ;;  %v1279_v16 = vand.u32 2147483647, %v3932_v17  ;;  %v1296_v52 = vshll.u32 %v3850_v63, %v3933_v62  ;;  %v1297_v3 = vshrl.u32 %v3875_v58, %v3934_v53 }
 0x19b   : > { %v1272_v23 = vxor.u32 2147483648, %v1266_v47  ;;  %v1276_v15 = vsel %vm1274_vm13, %v1275_v29, %v1266_v47  ;;  %v1074_v12 = vsel %vm1072_vm0, %v1073_v20, %v1071_v2  ;;  %v1532_v7 = vadd.s32 %v1531_v22, %v1527_v43 }
 0x19c   : > { %v1075_v44 = vclz %v1074_v12  ;;  %v1299_v26 = vshll.u32 %v3875_v58, %v3933_v62  ;;  %v1300_v18 = vshrl.u32 %v3874_v59, %v3934_v53  ;;  %v1302_v61 = vshll.u32 %v3874_v59, %v3933_v62 }
 0x19d   : > { %v1273_v48 = vsel %vm1271_vm14, %v1258_v0, %v1272_v23  ;;  %v1533_v8 = vadd.s32 536870912, %v1532_v7  ;;  %v1303_v45 = vshrl.u32 %v3871_v25, %v3934_v53  ;;  %vm971_vm11 = vcmp.lt.s32.totalorder %v3908_v19, 0 }
 0x19e   : > { %v1277_v37 = vsel %vm1270_vm12, %v1273_v48, %v1276_v15  ;;  %v2108_v9 = vadd.s32 4294967294, %v1075_v44  ;;  %v1286_v58 = vand.u32 8388607, %v1279_v16  ;;  %v1094_v51 = vsel %vm971_vm11, %v1093_v24, %v1069_v56 }
 0x19f   : > { %v1278_v31 = vsel %vm1267_vm7, nan, %v1277_v37  ;;  %v3467_v30 = vshrl.u32 %v1533_v8, 30  ;;  %vm1313_vm2 = vcmp.lt.s32.totalorder %v3926_v36, 3  ;;  %v1298_v25 = vor.u32 %v1297_v3, %v1296_v52 }
 0x1a0   : > { %1623 = vxpose.xlu0.b32.cont [3/4] (short) %v1278_v31, 128  ;;  %vm2109_vm3 = vcmp.lt.s32.totalorder %v2108_v9, 0  ;;  %v1301_v59 = vor.u32 %v1300_v18, %v1299_v26  ;;  %v1325_v13 = vsel %vm1313_vm2, %v3927_v54, %v1324_v14  ;;  %vm3475_vm4 = vcmp.le.f32.partialorder %v969_v49, 0.7853982 }
 0x1a1   : > { %v1078_v33 = vsel %vm2109_vm3, 0, %v2108_v9  ;;  %v1535_v40 = vshll.u32 %v3467_v30, 30  ;;  %v1304_v11 = vor.u32 %v1303_v45, %v1302_v61  ;;  %v1287_v56 = vor.u32 8388608, %v1286_v58 }
 0x1a2   : > { %v1079_v38 = vsub.s32 32, %v1078_v33  ;;  %v1083_v27 = vsub.s32 4294967266, %v1078_v33  ;;  %v1295_v39 = vshrl.u32 %v3850_v63, %v3934_v53  ;;  %v1096_v21 = vsel %vm3475_vm4, 0, %v1094_v51 }
 0x1a3   : > { %v1536_v55 = vsub.s32 %v1532_v7, %v1535_v40  ;;  %vm1311_vm6 = vcmp.lt.s32.totalorder %v3926_v36, 1  ;;  %vm1312_vm9 = vcmp.lt.s32.totalorder %v3926_v36, 2  ;;  %v1080_v49 = vshll.u32 %v1071_v2, %v1078_v33 }
 0x1a4   : > { %v1081_v32 = vshrl.u32 %v3383_v5, %v1079_v38  ;;  %v1084_v42 = vadd.s32 127, %v1083_v27  ;;  %v1319_v60 = vsel %vm1311_vm6, %v1298_v25, %v1301_v59  ;;  %v1321_v63 = vsel %vm1313_vm2, %v1304_v11, %v3435_v4 }
 0x1a5   : > { %vm1537_vm5 = vcmp.lt.s32.totalorder %v1536_v55, 0  ;;  %v1538_v54 = vsub.s32 0, %v1536_v55  ;;  %v1323_v50 = vsel %vm1311_vm6, %v1301_v59, %v1304_v11  ;;  %v3496_v41 = vshll.u32 %v1287_v56, 8 }
 0x1a6   : > { %v1082_v57 = vor.u32 %v1081_v32, %v1080_v49  ;;  %v1085_v28 = vshll.u32 %v1084_v42, 23  ;;  %v1326_v14 = vsel %vm1312_vm9, %v1323_v50, %v1325_v13  ;;  %v1316_v43 = vsel %vm1314_vm1, %v1304_v11, 2102212464 }
 0x1a7   : > { %v1539_v5 = vsel %vm1537_vm5, %v1538_v54, %v1536_v55  ;;  %v1330_v1 = vand.u32 65535, %v1326_v14  ;;  %v1331_v0 = vshrl.u32 %v1326_v14, 16  ;;  %v1322_v4 = vsel %vm1312_vm9, %v1319_v60, %v1321_v63 }
 0x1a8   : > { %v1086_v6 = vor.u32 4788187, %v1085_v28  ;;  %v1540_v2 = vclz %v1539_v5  ;;  %v1328_v34 = vand.u32 65535, %v3496_v41  ;;  %v3503_v47 = vadd.s32 3, %v1096_v21 }
 0x1a9   : > { %v3507_v29 = vsel %vm1311_vm6, %v1295_v39, %v1298_v25  ;;  %v1329_v20 = vshrl.u32 %v3496_v41, 16  ;;  %v1089_v22 = vcvt.s32.f32 %v1082_v57  ;;  %v1558_v23 = vsub.s32 4, %v3467_v30 }
 0x1aa   : > { %v1087_v24 = vand.u32 2147483647, %v1086_v6  ;;  %v2117_v62 = vadd.s32 4294967294, %v1540_v2  ;;  %v1333_v52 = vmul.u32 %v1331_v0, %v1328_v34  ;;  %v3513_v15 = vsel %vm1313_vm2, %v1301_v59, %v1316_v43 }
 0x1ab   : > { %v1334_v12 = vmul.u32 %v1330_v1, %v1329_v20  ;;  %v1353_v7 = vshrl.u32 %v1322_v4, 16  ;;  %v1332_v53 = vmul.u32 %v1330_v1, %v1328_v34  ;;  %v1335_v18 = vmul.u32 %v1331_v0, %v1329_v20 }
 0x1ac   : > { %v1090_v44 = vmul.f32 %v1089_v22, %v1087_v24  ;;  %vm2118_vm8 = vcmp.lt.s32.totalorder %v2117_v62, 0  ;;  %v1336_v3 = vshll.u32 %v1333_v52, 16  ;;  %v1337_v48 = vshrl.u32 %v1333_v52, 16 }
 0x1ad   : > { %v1543_v26 = vsel %vm2118_vm8, 0, %v2117_v62  ;;  %v1352_v8 = vand.u32 65535, %v1322_v4  ;;  %v1338_v9 = vshll.u32 %v1334_v12, 16  ;;  %v1355_v51 = vmul.u32 %v1353_v7, %v1328_v34 }
 0x1ae   : > { %v1091_v61 = vxor.u32 2147483648, %v1090_v44  ;;  %v1544_v45 = vsub.s32 32, %v1543_v26  ;;  %v1548_v37 = vsub.s32 4294967266, %v1543_v26  ;;  %v1545_v58 = vshll.u32 %v1536_v55, %v1543_v26 }
 0x1af   : > { %vm1340_vm10 = vc.u32 %v1332_v53, %v1336_v3  ;;  %v1342_v31 = vadd.s32 %v1336_v3, %v1332_v53  ;;  %v1356_v38 = vmul.u32 %v1352_v8, %v1329_v20  ;;  %v1339_v55 = vshrl.u32 %v1334_v12, 16  ;;  %v3937_v53 = vld [vmem:[#allocation14_spill] sm:$0xff] }
 0x1b0   : > { %v1092_v25 = vsel %vm971_vm11, %v1091_v61, %v1090_v44  ;;  %v1546_v59 = vshrl.u32 %v3424_v46, %v1544_v45  ;;  %v1549_v13 = vadd.s32 127, %v1548_v37  ;;  %v1341_v33 = vsel %vm1340_vm10, 1, %v3864_v35 }
 0x1b1   : > { %v1095_v40 = vsel %vm3475_vm4, %v3908_v19, %v1092_v25  ;;  %v1343_v11 = vadd.s32 %v1341_v33, %v1335_v18  ;;  %vm1344_vm15 = vc.u32 %v1342_v31, %v1338_v9  ;;  %v1354_v32 = vmul.u32 %v1352_v8, %v1328_v34 }
 0x1b2   : > { %v1097_v27 = vmul.f32 %v1095_v40, %v1095_v40  ;;  %v1547_v56 = vor.u32 %v1546_v59, %v1545_v58  ;;  %v1550_v39 = vshll.u32 %v1549_v13, 23  ;;  %v1345_v21 = vsel %vm1344_vm15, 1, %v3864_v35 }
 0x1b3   : > { %v1347_v49 = vadd.s32 %v1345_v21, %v1343_v11  ;;  %v1358_v42 = vshll.u32 %v1355_v51, 16  ;;  %v1357_v63 = vmul.u32 %v1353_v7, %v1329_v20  ;;  %v1360_v57 = vshll.u32 %v1356_v38, 16 }
 0x1b4   : > { %v1098_v46 = vmul.f32 -0.001358992, %v1097_v27  ;;  %v1105_v60 = vmul.f32 -0.00019511016, %v1097_v27  ;;  %v1551_v54 = vor.u32 4788187, %v1550_v39  ;;  %v1554_v43 = vcvt.s32.f32 %v1547_v56 }
 0x1b5   : > { %v1348_v50 = vadd.s32 %v1347_v49, %v1337_v48  ;;  %vm1362_vm1 = vc.u32 %v1354_v32, %v1358_v42  ;;  %v1364_v10 = vadd.s32 %v1358_v42, %v1354_v32  ;;  %v1359_v22 = vshrl.u32 %v1355_v51, 16 }
 0x1b6   : > { %v1099_v28 = vadd.f32 0.041655596, %v1098_v46  ;;  %v1106_v14 = vadd.f32 0.008332121, %v1105_v60  ;;  %v1552_v5 = vand.u32 2147483647, %v1551_v54  ;;  %v1318_v58 = vsel %vm1312_vm9, %v3507_v29, %v3513_v15 }
 0x1b7   : > { %v1349_v1 = vadd.s32 %v1348_v50, %v1339_v55  ;;  %v1363_v0 = vsel %vm1362_vm1, 1, %v3864_v35  ;;  %vm1366_vm7 = vc.u32 %v1364_v10, %v1360_v57  ;;  %v1368_v6 = vadd.s32 %v1364_v10, %v1360_v57 }
 0x1b8   : > { %v1100_v2 = vmul.f32 %v1099_v28, %v1097_v27  ;;  %v1107_v4 = vmul.f32 %v1106_v14, %v1097_v27  ;;  %v1555_v34 = vmul.f32 %v1554_v43, %v1552_v5  ;;  %v1365_v24 = vadd.s32 %v1363_v0, %v1357_v63 }
 0x1b9   : > { %v1367_v20 = vsel %vm1366_vm7, 1, %v3864_v35  ;;  %v3525_v62 = vadd.s32 %v1368_v6, %v1349_v1  ;;  %vm1374_vm12 = vc.u32 %v1349_v1, %v1368_v6  ;;  %vm1436_vm14 = vcmp.lt.s32.totalorder %v3937_v53, 0 }
 0x1ba   : > { %v1101_v52 = vadd.f32 -0.4999988, %v1100_v2  ;;  %v1108_v12 = vadd.f32 -0.16666654, %v1107_v4  ;;  %v1556_v7 = vxor.u32 2147483648, %v1555_v34  ;;  %v1369_v44 = vadd.s32 %v1367_v20, %v1365_v24 }
 0x1bb   : > { %v3938_v3 = vand.u32 2147483647, %v3937_v53  ;;  %v1361_v18 = vshrl.u32 %v1356_v38, 16  ;;  %v1114_v45 = vand.u32 3, %v3503_v47  ;;  %v1559_v37 = vsel %vm1436_vm14, %v1558_v23, %v3467_v30 }
 0x1bc   : > { %v1102_v48 = vmul.f32 %v1101_v52, %v1097_v27  ;;  %v1109_v8 = vmul.f32 %v1108_v12, %v1097_v27  ;;  %v1557_v61 = vsel %vm1436_vm14, %v1556_v7, %v1555_v34  ;;  %v1370_v35 = vadd.s32 %v1369_v44, %v1359_v22 }
 0x1bd   : > { %vm3530_vm13 = vcmp.le.f32.partialorder %v3938_v3, 0.7853982  ;;  %vm1119_vm0 = vcmp.eq.s32.totalorder %v1114_v45, 2  ;;  %v1372_v23 = vmul.u32 %v3496_v41, %v1318_v58  ;;  %vm1115_vm11 = vcmp.lt.s32.totalorder %v1114_v45, 2 }
 0x1be   : > { %v1560_v9 = vsel %vm3530_vm13, %v3937_v53, %v1557_v61  ;;  %v1103_v31 = vadd.f32 1.0, %v1102_v48  ;;  %v1110_v51 = vadd.f32 1.0, %v1109_v8  ;;  %v1371_v59 = vadd.s32 %v1370_v35, %v1361_v18 }
 0x1bf   : > { %v1562_v25 = vmul.f32 %v1560_v9, %v1560_v9  ;;  %v1561_v30 = vsel %vm3530_vm13, 0, %v1559_v37  ;;  %vm1116_vm2 = vcmp.eq.s32.totalorder %v1114_v45, 0  ;;  %vm1112_vm3 = vweird.f32 %v3908_v19 }
 0x1c0   : > { %v1111_v13 = vmul.f32 %v1110_v51, %v1095_v40  ;;  %v1120_v33 = vxor.u32 2147483648, %v1103_v31  ;;  %v1375_v38 = vadd.s32 1, %v1371_v59  ;;  %v1578_v32 = vadd.s32 3, %v1561_v30 }
 0x1c1   : > { %v1563_v47 = vmul.f32 -0.001358992, %v1562_v25  ;;  %v1570_v11 = vmul.f32 -0.00019511016, %v1562_v25  ;;  %vm1577_vm8 = vweird.f32 %v3937_v53  ;;  %vm1281_vm15 = vcmp.lt.s32.totalorder %v3932_v17, 0 }
 0x1c2   : > { %v1117_v27 = vxor.u32 2147483648, %v1111_v13  ;;  %v1121_v56 = vsel %vm1119_vm0, %v1120_v33, %v1111_v13  ;;  %v1376_v29 = vsel %vm1374_vm12, %v1375_v38, %v1371_v59  ;;  %v1579_v57 = vand.u32 3, %v1578_v32 }
 0x1c3   : > { %v1564_v39 = vadd.f32 0.041655596, %v1563_v47  ;;  %v1571_v36 = vadd.f32 0.008332121, %v1570_v11  ;;  %v1377_v55 = vadd.s32 %v1376_v29, %v1372_v23  ;;  %vm1280_vm1 = vcmp.le.f32.partialorder %v1279_v16, 0.7853982 }
 0x1c4   : > { %v1118_v15 = vsel %vm1116_vm2, %v1103_v31, %v1117_v27  ;;  %vm1584_vm4 = vcmp.eq.s32.totalorder %v1579_v57, 2  ;;  %vm1581_vm9 = vcmp.eq.s32.totalorder %v1579_v57, 0  ;;  %vm1580_vm5 = vcmp.lt.s32.totalorder %v1579_v57, 2 }
 0x1c5   : > { %v1565_v40 = vmul.f32 %v1564_v39, %v1562_v25  ;;  %v1572_v21 = vmul.f32 %v1571_v36, %v1562_v25  ;;  %v1122_v49 = vsel %vm1115_vm11, %v1118_v15, %v1121_v56  ;;  %v1378_v60 = vadd.s32 536870912, %v1377_v55 }
 0x1c6   : > { %v1123_v42 = vsel %vm1112_vm3, nan, %v1122_v49  ;;  %vm1422_vm13 = vweird.f32 %v3932_v17  ;;  %vm1653_vm0 = vcmask 261120  }
 0x1c7   : > { %v1566_v46 = vadd.f32 -0.4999988, %v1565_v40  ;;  %v1573_v41 = vadd.f32 -0.16666654, %v1572_v21  ;;  %1591 = vxpose.xlu2.b32.cont [3/4] (short) %v1123_v42, 128  ;;  %v1379_v50 = vshrl.u32 %v1378_v60, 30 }
 0x1c9   : > { %v1567_v54 = vmul.f32 %v1566_v46, %v1562_v25  ;;  %v1574_v63 = vmul.f32 %v1573_v41, %v1562_v25  ;;  %v1380_v14 = vshll.u32 %v1379_v50, 30  ;;  %v1403_v37 = vsub.s32 4, %v1379_v50 }
 0x1cb   : > { %v1568_v10 = vadd.f32 1.0, %v1567_v54  ;;  %v1575_v28 = vadd.f32 1.0, %v1574_v63  ;;  %v1381_v1 = vsub.s32 %v1377_v55, %v1380_v14  ;;  %v1404_v51 = vsel %vm1281_vm15, %v1403_v37, %v1379_v50 }
 0x1cc   : > { %v1406_v59 = vsel %vm1280_vm1, 0, %v1404_v51 }
 0x1cd   : > { %v1576_v5 = vmul.f32 %v1575_v28, %v1560_v9  ;;  %v1585_v43 = vxor.u32 2147483648, %v1568_v10  ;;  %vm1382_vm6 = vcmp.lt.s32.totalorder %v1381_v1, 0  ;;  %v1383_v6 = vsub.s32 0, %v1381_v1 }
 0x1ce   : > { %v1423_v30 = vadd.s32 3, %v1406_v59 }
 0x1cf   : > { %v1582_v0 = vxor.u32 2147483648, %v1576_v5  ;;  %v1586_v19 = vsel %vm1584_vm4, %v1585_v43, %v1576_v5  ;;  %v1384_v4 = vsel %vm1382_vm6, %v1383_v6, %v1381_v1 }
 0x1d0   : > { %v1385_v24 = vclz %v1384_v4  ;;  %v1424_v39 = vand.u32 3, %v1423_v30 }
 0x1d1   : > { %v1583_v2 = vsel %vm1581_vm9, %v1568_v10, %v1582_v0 }
 0x1d2   : > { %v1587_v34 = vsel %vm1580_vm5, %v1583_v2, %v1586_v19  ;;  %v2114_v20 = vadd.s32 4294967294, %v1385_v24  ;;  %vm1429_vm7 = vcmp.eq.s32.totalorder %v1424_v39, 2  ;;  %vm1426_vm12 = vcmp.eq.s32.totalorder %v1424_v39, 0 }
 0x1d3   : > { %v1588_v22 = vsel %vm1577_vm8, nan, %v1587_v34  ;;  %vm1425_vm14 = vcmp.lt.s32.totalorder %v1424_v39, 2 }
 0x1d4   : > { %1624 = vxpose.xlu0.b32.end [4/4] (short) %v1588_v22, 128  ;;  %vm2115_vm10 = vcmp.lt.s32.totalorder %v2114_v20, 0 }
 0x1d5   : > { %v1388_v52 = vsel %vm2115_vm10, 0, %v2114_v20 }
 0x1d6   : > { %v1389_v12 = vsub.s32 32, %v1388_v52  ;;  %v1393_v7 = vsub.s32 4294967266, %v1388_v52  ;;  %v1390_v44 = vshll.u32 %v1381_v1, %v1388_v52 }
 0x1d8   : > { %v1391_v3 = vshrl.u32 %v3525_v62, %v1389_v12  ;;  %v1394_v26 = vadd.s32 127, %v1393_v7 }
 0x1da   : > { %v1392_v18 = vor.u32 %v1391_v3, %v1390_v44  ;;  %v1395_v48 = vshll.u32 %v1394_v26, 23 }
 0x1dc   : > { %v1396_v8 = vor.u32 4788187, %v1395_v48  ;;  %v1399_v35 = vcvt.s32.f32 %v1392_v18 }
 0x1de   : > { %v1397_v61 = vand.u32 2147483647, %v1396_v8 }
 0x1e0   : > { %v1400_v45 = vmul.f32 %v1399_v35, %v1397_v61 }
 0x1e2   : > { %v1401_v53 = vxor.u32 2147483648, %v1400_v45 }
 0x1e4   : > { %v1402_v9 = vsel %vm1281_vm15, %v1401_v53, %v1400_v45 }
 0x1e5   : > { %v1405_v58 = vsel %vm1280_vm1, %v3932_v17, %v1402_v9 }
 0x1e6   : > { %v1407_v31 = vmul.f32 %v1405_v58, %v1405_v58 }
 0x1e8   : > { %v1408_v62 = vmul.f32 -0.001358992, %v1407_v31  ;;  %v1415_v25 = vmul.f32 -0.00019511016, %v1407_v31 }
 0x1ea   : > { %v1409_v13 = vadd.f32 0.041655596, %v1408_v62  ;;  %v1416_v33 = vadd.f32 0.008332121, %v1415_v25 }
 0x1ec   : > { %v1410_v47 = vmul.f32 %v1409_v13, %v1407_v31  ;;  %v1417_v11 = vmul.f32 %v1416_v33, %v1407_v31 }
 0x1ee   : > { %v1411_v23 = vadd.f32 -0.4999988, %v1410_v47  ;;  %v1418_v38 = vadd.f32 -0.16666654, %v1417_v11 }
 0x1f0   : > { %v1412_v27 = vmul.f32 %v1411_v23, %v1407_v31  ;;  %v1419_v56 = vmul.f32 %v1418_v38, %v1407_v31 }
 0x1f2   : > { %v1413_v16 = vadd.f32 1.0, %v1412_v27  ;;  %v1420_v36 = vadd.f32 1.0, %v1419_v56 }
 0x1f4   : > { %v1421_v29 = vmul.f32 %v1420_v36, %v1405_v58  ;;  %v1430_v15 = vxor.u32 2147483648, %v1413_v16 }
 0x1f6   : > { %v1427_v40 = vxor.u32 2147483648, %v1421_v29  ;;  %v1431_v21 = vsel %vm1429_vm7, %v1430_v15, %v1421_v29 }
 0x1f8   : > { %v1428_v55 = vsel %vm1426_vm12, %v1413_v16, %v1427_v40 }
 0x1f9   : > { %v1432_v49 = vsel %vm1425_vm14, %v1428_v55, %v1431_v21 }
 0x1fa   : > { %v1433_v32 = vsel %vm1422_vm13, nan, %v1432_v49 }
 0x1fb   : > { %1592 = vxpose.xlu2.b32.end [4/4] (short) %v1433_v32, 128 }
 0x260   : > { %v1637_v42 = vpop.trf.xlu0 }
 0x261   : > { %1670 = vst.msk [vmem:[%s3558_s29 + $0x80] sm:$0xff] %vm1653_vm0, %v1637_v42 }
 0x268   : > { %v1638_v17 = vpop.trf.xlu0 }
 0x269   : > { %1671 = vst.msk [vmem:[%s3558_s29 + $0x88] sm:$0xff] %vm1653_vm0, %v1638_v17 }
 0x270   : > { %v1639_v46 = vpop.trf.xlu0 }
 0x271   : > { %1672 = vst.msk [vmem:[%s3558_s29 + $0x90] sm:$0xff] %vm1653_vm0, %v1639_v46 }
 0x278   : > { %v1640_v41 = vpop.trf.xlu0 }
 0x279   : > { %1673 = vst.msk [vmem:[%s3558_s29 + $0x98] sm:$0xff] %vm1653_vm0, %v1640_v41 }
 0x27c   : > { %v1605_v60 = vpop.trf.xlu2 }
 0x27d   : > { %1654 = vst.msk [vmem:[%s3558_s29] sm:$0xff] %vm1653_vm0, %v1605_v60 }
 0x280   : > { %v1641_v54 = vpop.trf.xlu0 }
 0x281   : > { %1674 = vst.msk [vmem:[%s3558_s29 + $0xa0] sm:$0xff] %vm1653_vm0, %v1641_v54 }
 0x284   : > { %v1606_v63 = vpop.trf.xlu2 }
 0x285   : > { %1655 = vst.msk [vmem:[%s3558_s29 + $0x8] sm:$0xff] %vm1653_vm0, %v1606_v63 }
 0x288   : > { %v1642_v50 = vpop.trf.xlu0 }
 0x289   : > { %1675 = vst.msk [vmem:[%s3558_s29 + $0xa8] sm:$0xff] %vm1653_vm0, %v1642_v50 }
 0x28c   : > { %v1607_v57 = vpop.trf.xlu2 }
 0x28d   : > { %1656 = vst.msk [vmem:[%s3558_s29 + $0x10] sm:$0xff] %vm1653_vm0, %v1607_v57 }
 0x290   : > { %v1643_v10 = vpop.trf.xlu0 }
 0x291   : > { %1676 = vst.msk [vmem:[%s3558_s29 + $0xb0] sm:$0xff] %vm1653_vm0, %v1643_v10 }
 0x294   : > { %v1608_v28 = vpop.trf.xlu2 }
 0x295   : > { %1657 = vst.msk [vmem:[%s3558_s29 + $0x18] sm:$0xff] %vm1653_vm0, %v1608_v28 }
 0x298   : > { %v1644_v14 = vpop.trf.xlu0 }
 0x299   : > { %1677 = vst.msk [vmem:[%s3558_s29 + $0xb8] sm:$0xff] %vm1653_vm0, %v1644_v14 }
 0x29c   : > { %v1609_v5 = vpop.trf.xlu2 }
 0x29d   : > { %1658 = vst.msk [vmem:[%s3558_s29 + $0x20] sm:$0xff] %vm1653_vm0, %v1609_v5 }
 0x2a0   : > { %v1645_v43 = vpop.trf.xlu0 }
 0x2a1   : > { %1678 = vst.msk [vmem:[%s3558_s29 + $0xc0] sm:$0xff] %vm1653_vm0, %v1645_v43 }
 0x2a4   : > { %v1610_v1 = vpop.trf.xlu2 }
 0x2a5   : > { %1659 = vst.msk [vmem:[%s3558_s29 + $0x28] sm:$0xff] %vm1653_vm0, %v1610_v1 }
 0x2a8   : > { %v1646_v0 = vpop.trf.xlu0 }
 0x2a9   : > { %1679 = vst.msk [vmem:[%s3558_s29 + $0xc8] sm:$0xff] %vm1653_vm0, %v1646_v0 }
 0x2ac   : > { %v1611_v19 = vpop.trf.xlu2 }
 0x2ad   : > { %1660 = vst.msk [vmem:[%s3558_s29 + $0x30] sm:$0xff] %vm1653_vm0, %v1611_v19 }
 0x2b0   : > { %v1647_v6 = vpop.trf.xlu0 }
 0x2b1   : > { %1680 = vst.msk [vmem:[%s3558_s29 + $0xd0] sm:$0xff] %vm1653_vm0, %v1647_v6 }
 0x2b4   : > { %v1612_v2 = vpop.trf.xlu2 }
 0x2b5   : > { %1661 = vst.msk [vmem:[%s3558_s29 + $0x38] sm:$0xff] %vm1653_vm0, %v1612_v2 }
 0x2b8   : > { %v1648_v4 = vpop.trf.xlu0 }
 0x2b9   : > { %1681 = vst.msk [vmem:[%s3558_s29 + $0xd8] sm:$0xff] %vm1653_vm0, %v1648_v4 }
 0x2bc   : > { %v1613_v34 = vpop.trf.xlu2 }
 0x2bd   : > { %1662 = vst.msk [vmem:[%s3558_s29 + $0x40] sm:$0xff] %vm1653_vm0, %v1613_v34 }
 0x2c0   : > { %v1649_v24 = vpop.trf.xlu0 }
 0x2c1   : > { %1682 = vst.msk [vmem:[%s3558_s29 + $0xe0] sm:$0xff] %vm1653_vm0, %v1649_v24 }
 0x2c4   : > { %v1614_v22 = vpop.trf.xlu2 }
 0x2c5   : > { %1663 = vst.msk [vmem:[%s3558_s29 + $0x48] sm:$0xff] %vm1653_vm0, %v1614_v22 }
 0x2c8   : > { %v1650_v20 = vpop.trf.xlu0 }
 0x2c9   : > { %1683 = vst.msk [vmem:[%s3558_s29 + $0xe8] sm:$0xff] %vm1653_vm0, %v1650_v20 }
 0x2cc   : > { %v1615_v52 = vpop.trf.xlu2 }
 0x2cd   : > { %1664 = vst.msk [vmem:[%s3558_s29 + $0x50] sm:$0xff] %vm1653_vm0, %v1615_v52 }
 0x2d0   : > { %v1651_v12 = vpop.trf.xlu0 }
 0x2d1   : > { %1684 = vst.msk [vmem:[%s3558_s29 + $0xf0] sm:$0xff] %vm1653_vm0, %v1651_v12 }
 0x2d4   : > { %v1616_v7 = vpop.trf.xlu2 }
 0x2d5   : > { %1665 = vst.msk [vmem:[%s3558_s29 + $0x58] sm:$0xff] %vm1653_vm0, %v1616_v7 }
 0x2d8   : > { %v1652_v44 = vpop.trf.xlu0 }
 0x2d9   : > { %1685 = vst.msk [vmem:[%s3558_s29 + $0xf8] sm:$0xff] %vm1653_vm0, %v1652_v44 }
 0x2dc   : > { %v1617_v3 = vpop.trf.xlu2 }
 0x2dd   : > { %1666 = vst.msk [vmem:[%s3558_s29 + $0x60] sm:$0xff] %vm1653_vm0, %v1617_v3 }
 0x2e4   : > { %v1618_v26 = vpop.trf.xlu2 }
 0x2e5   : > { %1667 = vst.msk [vmem:[%s3558_s29 + $0x68] sm:$0xff] %vm1653_vm0, %v1618_v26 }
 0x2ec   : > { %v1619_v18 = vpop.trf.xlu2 }
 0x2ed   : > { %1668 = vst.msk [vmem:[%s3558_s29 + $0x70] sm:$0xff] %vm1653_vm0, %v1619_v18 }
 0x2f1   : > { %1692 = sbr.rel (!%p2466_p5) target bundleno = 822 (0x336), region = 36 }
 0x2f4   : > { %v1620_v48 = vpop.trf.xlu2 }
 0x2f5   : > { %1669 = vst.msk [vmem:[%s3558_s29 + $0x78] sm:$0xff] %vm1653_vm0, %v1620_v48 }
 0x2f6   : > { %s3961_s4 = smov (!%p1695_p11, %s1694_s4), 32 }
 0x2f7   : > { %s2121_s10 = sshll.u32 %s3961_s4, 3 }
 0x2f8   : > { %p2124_p12 = scmp.eq.s32.totalorder %s2121_s10, 0 }
 0x2f9   : > { %s3637_s23 = sshrl.u32 (!%p2124_p12), %s3961_s4, 5 }
 0x2fa   : > { %1705 = sbr.rel (%p2124_p12) target bundleno = 822 (0x336), region = 40  ;;  %p2125_p13 = scmp.le.s32.totalorder (!%p2124_p12), %s3637_s23, 0 }
 0x2ff   : > { %2005 = sbr.rel (%p2125_p13) target bundleno = 805 (0x325), region = 122  ;;  %s3941_s14 = smov (!%p2125_p13), %s3633_s9 }
 0x300   : > { %s3942_s15 = smov (!%p2125_p13), %s3558_s29  ;;  %s3646_s11 = smov (!%p2125_p13), 0  }
 0x301   : > { %s3648_s21 = smov (!%p2125_p13), 0  }
 0x304 LB: >> { %v1830_v8 = vld [vmem:[%s2367_s15] sm:$0xff]  ;;  %v1832_v61 = vld [vmem:[%s2367_s15 + $0x8] sm:$0xff]  ;;  %v1834_v35 = vld [vmem:[%s2367_s15 + $0x10] sm:$0xff]  ;;  %s1894_s22 = sadd.s32 1, %s2371_s11  ;;  %s1824_s21 = sadd.s32 1, %s2375_s21   ;;  %s2375_s21 = sphi %s3648_s21, %s1824_s21   ;;  %s2371_s11 = sphi %s3646_s11, %s3945_s11   ;;  %s2367_s15 = sphi %s3942_s15, %s3944_s15   ;;  %s2363_s14 = sphi %s3941_s14, %s3943_s14  }
 0x305   : >> { %1831 = vst [vmem:[%s2363_s14] sm:$0xff] %v1830_v8  ;;  %v1836_v45 = vld [vmem:[%s2367_s15 + $0x18] sm:$0xff]  ;;  %p1895_p0 = scmp.ge.s32.totalorder %s1894_s22, %s3637_s23  ;;  %v1838_v53 = vld [vmem:[%s2367_s15 + $0x20] sm:$0xff]  ;;  %v1840_v37 = vld [vmem:[%s2367_s15 + $0x28] sm:$0xff]  ;;  %p1823_p1 = scmp.ge.s32.totalorder %s1824_s21, %s3637_s23 }
 0x306   : >> { %1833 = vst [vmem:[%s2363_s14 + $0x8] sm:$0xff] %v1832_v61  ;;  %v1842_v9 = vld [vmem:[%s2367_s15 + $0x30] sm:$0xff]  ;;  %v1844_v58 = vld [vmem:[%s2367_s15 + $0x38] sm:$0xff]  ;;  %v1846_v31 = vld [vmem:[%s2367_s15 + $0x40] sm:$0xff] }
 0x307   : >> { %1835 = vst [vmem:[%s2363_s14 + $0x10] sm:$0xff] %v1834_v35  ;;  %s3963_s22 = smov (%p1895_p0, %s1894_s22), 0  ;;  %v1848_v51 = vld [vmem:[%s2367_s15 + $0x48] sm:$0xff]  ;;  %v1850_v62 = vld [vmem:[%s2367_s15 + $0x50] sm:$0xff]  ;;  %v1852_v25 = vld [vmem:[%s2367_s15 + $0x58] sm:$0xff] }
 0x308   : >> { %1837 = vst [vmem:[%s2363_s14 + $0x18] sm:$0xff] %v1836_v45  ;;  %s2126_s24 = sshll.u32 %s3963_s22, 8  ;;  %v1854_v59 = vld [vmem:[%s2367_s15 + $0x60] sm:$0xff]  ;;  %v1856_v13 = vld [vmem:[%s2367_s15 + $0x68] sm:$0xff]  ;;  %v1858_v33 = vld [vmem:[%s2367_s15 + $0x70] sm:$0xff]  ;;  %s3945_s11 = smov %s3963_s22 }
 0x309   : >> { %1839 = vst [vmem:[%s2363_s14 + $0x20] sm:$0xff] %v1838_v53  ;;  %s3680_s25 = scalar_lea.vmem %s3558_s29, %s2126_s24 [#allocation2]   ;;  %s3683_s26 = scalar_lea.vmem %s3633_s9, %s2126_s24   ;;  %v1860_v47 = vld [vmem:[%s2367_s15 + $0x78] sm:$0xff]  ;;  %v1862_v11 = vld [vmem:[%s2367_s15 + $0x80] sm:$0xff]  ;;  %v1864_v30 = vld [vmem:[%s2367_s15 + $0x88] sm:$0xff] }
 0x30a   : >> { %1841 = vst [vmem:[%s2363_s14 + $0x28] sm:$0xff] %v1840_v37  ;;  %v1866_v23 = vld [vmem:[%s2367_s15 + $0x90] sm:$0xff]  ;;  %v1868_v38 = vld [vmem:[%s2367_s15 + $0x98] sm:$0xff]  ;;  %v1870_v27 = vld [vmem:[%s2367_s15 + $0xa0] sm:$0xff] }
 0x30b   : >> { %1843 = vst [vmem:[%s2363_s14 + $0x30] sm:$0xff] %v1842_v9  ;;  %v1872_v56 = vld [vmem:[%s2367_s15 + $0xa8] sm:$0xff]  ;;  %v1874_v39 = vld [vmem:[%s2367_s15 + $0xb0] sm:$0xff]  ;;  %v1876_v16 = vld [vmem:[%s2367_s15 + $0xb8] sm:$0xff] }
 0x30c   : >> { %1845 = vst [vmem:[%s2363_s14 + $0x38] sm:$0xff] %v1844_v58  ;;  %v1878_v36 = vld [vmem:[%s2367_s15 + $0xc0] sm:$0xff]  ;;  %v1880_v29 = vld [vmem:[%s2367_s15 + $0xc8] sm:$0xff]  ;;  %v1882_v15 = vld [vmem:[%s2367_s15 + $0xd0] sm:$0xff] }
 0x30d   : >> { %1847 = vst [vmem:[%s2363_s14 + $0x40] sm:$0xff] %v1846_v31  ;;  %v1884_v40 = vld [vmem:[%s2367_s15 + $0xd8] sm:$0xff]  ;;  %v1886_v21 = vld [vmem:[%s2367_s15 + $0xe0] sm:$0xff]  ;;  %v1888_v55 = vld [vmem:[%s2367_s15 + $0xe8] sm:$0xff] }
 0x30e   : >> { %1849 = vst [vmem:[%s2363_s14 + $0x48] sm:$0xff] %v1848_v51  ;;  %v1890_v49 = vld [vmem:[%s2367_s15 + $0xf0] sm:$0xff]  ;;  %v1892_v32 = vld [vmem:[%s2367_s15 + $0xf8] sm:$0xff]  ;;  %s3944_s15 = smov %s3680_s25 }
 0x30f   : >> { %1851 = vst [vmem:[%s2363_s14 + $0x50] sm:$0xff] %v1850_v62 }
 0x310   : >> { %1853 = vst [vmem:[%s2363_s14 + $0x58] sm:$0xff] %v1852_v25 }
 0x311   : >> { %1855 = vst [vmem:[%s2363_s14 + $0x60] sm:$0xff] %v1854_v59 }
 0x312   : >> { %1857 = vst [vmem:[%s2363_s14 + $0x68] sm:$0xff] %v1856_v13 }
 0x313   : >> { %1859 = vst [vmem:[%s2363_s14 + $0x70] sm:$0xff] %v1858_v33 }
 0x314   : >> { %1861 = vst [vmem:[%s2363_s14 + $0x78] sm:$0xff] %v1860_v47 }
 0x315   : >> { %1863 = vst [vmem:[%s2363_s14 + $0x80] sm:$0xff] %v1862_v11 }
 0x316   : >> { %1865 = vst [vmem:[%s2363_s14 + $0x88] sm:$0xff] %v1864_v30 }
 0x317   : >> { %1867 = vst [vmem:[%s2363_s14 + $0x90] sm:$0xff] %v1866_v23 }
 0x318   : >> { %1869 = vst [vmem:[%s2363_s14 + $0x98] sm:$0xff] %v1868_v38 }
 0x319   : >> { %1871 = vst [vmem:[%s2363_s14 + $0xa0] sm:$0xff] %v1870_v27 }
 0x31a   : >> { %1873 = vst [vmem:[%s2363_s14 + $0xa8] sm:$0xff] %v1872_v56 }
 0x31b   : >> { %1875 = vst [vmem:[%s2363_s14 + $0xb0] sm:$0xff] %v1874_v39 }
 0x31c   : >> { %1877 = vst [vmem:[%s2363_s14 + $0xb8] sm:$0xff] %v1876_v16 }
 0x31d   : >> { %1879 = vst [vmem:[%s2363_s14 + $0xc0] sm:$0xff] %v1878_v36 }
 0x31e   : >> { %1881 = vst [vmem:[%s2363_s14 + $0xc8] sm:$0xff] %v1880_v29 }
 0x31f   : >> { %1883 = vst [vmem:[%s2363_s14 + $0xd0] sm:$0xff] %v1882_v15 }
 0x320   : >> { %1885 = vst [vmem:[%s2363_s14 + $0xd8] sm:$0xff] %v1884_v40  ;;  %1826 = sbr.rel (!%p1823_p1) target bundleno = 772 (0x304), region = 128 }
 0x321   : >> { %1887 = vst [vmem:[%s2363_s14 + $0xe0] sm:$0xff] %v1886_v21 }
 0x322   : >> { %1889 = vst [vmem:[%s2363_s14 + $0xe8] sm:$0xff] %v1888_v55 }
 0x323   : >> { %1891 = vst [vmem:[%s2363_s14 + $0xf0] sm:$0xff] %v1890_v49 }
 0x324   : >> { %1893 = vst [vmem:[%s2363_s14 + $0xf8] sm:$0xff] %v1892_v32  ;;  %s3943_s14 = smov %s3683_s26 }
 0x325 PF: > { %s3748_s28 = sand.u32 31, %s3961_s4   ;;  %s2138_s12 = sshll.u32 %s3637_s23, 8 }
 0x326   : > { %s1905_s30 = scalar_lea.vmem %s3558_s29, %s2138_s12 [#allocation2]   ;;  %s1907_s5 = scalar_lea.vmem %s3633_s9, %s2138_s12  }
 0x327   : > { %p2131_p2 = scmp.le.s32.totalorder %s3748_s28, 0 }
 0x328   : > { %s2377_s6 = smov (!%p2131_p2), %s1907_s5   ;;  %s2381_s7 = smov (!%p2131_p2), %s1905_s30  }
 0x329   : > { %2019 = sbr.rel (%p2131_p2) target bundleno = 822 (0x336), region = 133  ;;  %s2385_s8 = smov (!%p2131_p2), 0  }
 0x32a   : > { %s2389_s10 = smov (!%p2131_p2), 0  }
 0x32e LB: >> { %v1917_v42 = vld [vmem:[%s2383_s7] sm:$0xff]  ;;  %s1919_s4 = sadd.s32 1, %s2387_s8  ;;  %s1911_s10 = sadd.s32 1, %s2391_s10   ;;  %s2391_s10 = sphi %s2389_s10, %s1911_s10   ;;  %s2387_s8 = sphi %s2385_s8, %s2386_s8   ;;  %s2383_s7 = sphi %s2381_s7, %s1924_s7   ;;  %s2379_s6 = sphi %s2377_s6, %s1925_s6  }
 0x32f   : >> { %1918 = vst [vmem:[%s2379_s6] sm:$0xff] %v1917_v42  ;;  %p1920_p3 = scmp.ge.s32.totalorder %s1919_s4, %s3748_s28  ;;  %p1910_p4 = scmp.ge.s32.totalorder %s1911_s10, %s3748_s28 }
 0x331   : >> { %s3965_s4 = smov (%p1920_p3, %s1919_s4), 0  ;;  %1913 = sbr.rel (!%p1910_p4) target bundleno = 814 (0x32e), region = 139 }
 0x332   : >> { %s2132_s29 = sshll.u32 %s3965_s4, 3  ;;  %s2386_s8 = smov %s3965_s4  }
 0x333   : >> { %s1924_s7 = scalar_lea.vmem %s1905_s30, %s2132_s29 [#allocation2]   ;;  %s1925_s6 = scalar_lea.vmem %s1907_s5, %s2132_s29  }
 0x336 PF: > { %s13_s18 = sadd.s32 1, %s2359_s18   ;;  %s3946_s12 = smov %s2339_s13 }
 0x337   : > { %p10_p5 = scmp.ge.s32.totalorder %s13_s18, 10   ;;  %s3947_s13 = smov %s2477_s27 }
 0x338   : > { %s3948_s14 = smov %s2351_s16  ;;  %s3949_s15 = smov %s2355_s17 }
 0x339   : > { %s3950_s16 = smov %s3953_s19  ;;  %s3951_s17 = smov %s3957_s20 }
 0x33a   :  { %12 = sbr.rel (!%p10_p5) target bundleno = 4 (0x4), region = 150 }

</bundles_post_ra>
